<compile_context>
chip_gen: v7x
topology: tpu7x:2x2x1
jax: 0.10.0
libtpu: 0.0.40
codegen_flags: <defaults>
</compile_context>

<pallas_src>
import functools

import jax
import jax.numpy as jnp
from jax.experimental import pallas as pl
from jax.experimental.pallas import tpu as pltpu


def _round_up(n, m):
    return ((n + m - 1) // m) * m


def _layer_norm(t, g, b, eps):
    mu = jnp.mean(t, axis=-1, keepdims=True)
    var = jnp.mean(jnp.square(t - mu), axis=-1, keepdims=True)
    return (t - mu) * jax.lax.rsqrt(var + eps) * g + b


def _gelu_tanh(t):
    # TODO(synk): PyTorch nn.GELU() default is the exact erf GELU; the tanh
    # approximation is used here for guaranteed Mosaic lowering (diff < 1e-3).
    c = 0.7978845608028654  # sqrt(2/pi)
    return 0.5 * t * (1.0 + jnp.tanh(c * (t + 0.044715 * t * t * t)))


def _perceiver_decoder_kernel(
    oq_ref, x_ref,
    qln_g_ref, qln_b_ref, kvln_g_ref, kvln_b_ref,
    wq_ref, bq_ref, wk_ref, bk_ref, wv_ref, bv_ref, wo_ref, bo_ref,
    mln_g_ref, mln_b_ref, w1_ref, b1_ref, w2_ref, b2_ref,
    wh_ref, bh_ref,
    out_ref,
    *, num_heads, dqk, dv, dp_scale, ln_eps):
    """One batch element per grid step. oq: (O,F) query prototype, x: (L,C) latents."""
    oq = oq_ref[...].astype(jnp.float32)          # (O, F)
    x = x_ref[...].astype(jnp.float32)            # (L, C)

    # CrossAttention: pre-LayerNorms
    q_in = _layer_norm(oq, qln_g_ref[...], qln_b_ref[...], ln_eps)    # (O, F)
    kv_in = _layer_norm(x, kvln_g_ref[...], kvln_b_ref[...], ln_eps)  # (L, C)

    # Q/K/V projections (weights already stored as (in, out))
    q = jnp.dot(q_in, wq_ref[...], preferred_element_type=jnp.float32) + bq_ref[...]   # (O, QK)
    k = jnp.dot(kv_in, wk_ref[...], preferred_element_type=jnp.float32) + bk_ref[...]  # (L, QK)
    v = jnp.dot(kv_in, wv_ref[...], preferred_element_type=jnp.float32) + bv_ref[...]  # (L, V)

    # Per-head attention; head merge is fused into o_proj:
    #   concat_h(ctx_h) @ Wo == sum_h ctx_h @ Wo[h*dv:(h+1)*dv, :]
    o_acc = jnp.zeros(oq.shape, jnp.float32)      # (O, F)
    for h in range(num_heads):
        q_h = q[:, h * dqk:(h + 1) * dqk]         # (O, dqk)
        k_h = k[:, h * dqk:(h + 1) * dqk]         # (L, dqk)
        v_h = v[:, h * dv:(h + 1) * dv]           # (L, dv)
        # contract on last dims directly (no data-movement transpose of k_h)
        s = jax.lax.dot_general(
            q_h, k_h, (((1,), (1,)), ((), ())),
            preferred_element_type=jnp.float32) * dp_scale           # (O, L)
        s = s - jnp.max(s, axis=-1, keepdims=True)
        p = jnp.exp(s)
        p = p / jnp.sum(p, axis=-1, keepdims=True)
        ctx = jnp.dot(p, v_h, preferred_element_type=jnp.float32)    # (O, dv)
        o_acc = o_acc + jnp.dot(ctx, wo_ref[h * dv:(h + 1) * dv, :],
                                preferred_element_type=jnp.float32)  # (O, F)
    attn_out = o_acc + bo_ref[...] + oq           # Residual(CrossAttention): adds pre-norm query

    # Residual(MLP): LayerNorm -> Linear -> GELU -> Linear (+ residual)
    h_in = _layer_norm(attn_out, mln_g_ref[...], mln_b_ref[...], ln_eps)
    hid = _gelu_tanh(
        jnp.dot(h_in, w1_ref[...], preferred_element_type=jnp.float32) + b1_ref[...])
    mlp_out = (jnp.dot(hid, w2_ref[...], preferred_element_type=jnp.float32)
               + b2_ref[...] + attn_out)          # (O, F)

    # Output-adapter linear head, fused into the epilogue (class dim padded to a
    # multiple of 128 lanes -> unmasked, lane-dense store).
    # TODO(synk): base OutputAdapter.forward is task-specific/abstract; a
    # classification-style Linear(F -> num_classes) head (as in the previous
    # kernel) is used here.
    y = jnp.dot(mlp_out, wh_ref[...], preferred_element_type=jnp.float32) + bh_ref[...]
    out_ref[...] = y.astype(out_ref.dtype)        # (O, N_pad)


def perceiver_decoder_forward(x, params):
    """x: (B, L, C_latent) float32 latents from the Perceiver encoder."""
    B, L, C = x.shape
    oq = params["output_query"]
    O, F = oq.shape
    H = int(params["num_heads"])
    QK = params["wq"].shape[1]
    V = params["wv"].shape[1]
    HID = params["w1"].shape[1]
    NP = params["w_head"].shape[1]                # padded class dim (multiple of 128)
    dqk, dv = QK // H, V // H

    kernel = functools.partial(
        _perceiver_decoder_kernel,
        num_heads=H, dqk=dqk, dv=dv,
        dp_scale=float(dqk) ** -0.5, ln_eps=1e-5)

    def rep(shape):   # parameter block, resident across grid steps
        return pl.BlockSpec(shape, lambda b: (0,) * len(shape))

    out = pl.pallas_call(
        kernel,
        out_shape=jax.ShapeDtypeStruct((B, O, NP), x.dtype),
        grid=(B,),
        in_specs=[
            rep((O, F)),                                      # output query prototype
            pl.BlockSpec((None, L, C), lambda b: (b, 0, 0)),  # latents, per batch element
            rep((1, F)), rep((1, F)),                         # q LayerNorm gamma/beta
            rep((1, C)), rep((1, C)),                         # kv LayerNorm gamma/beta
            rep((F, QK)), rep((1, QK)),                       # q_proj
            rep((C, QK)), rep((1, QK)),                       # k_proj
            rep((C, V)), rep((1, V)),                         # v_proj
            rep((V, F)), rep((1, F)),                         # o_proj
            rep((1, F)), rep((1, F)),                         # MLP LayerNorm gamma/beta
            rep((F, HID)), rep((1, HID)),                     # MLP fc1
            rep((HID, F)), rep((1, F)),                       # MLP fc2
            rep((F, NP)), rep((1, NP)),                       # output-adapter head (padded)
        ],
        out_specs=pl.BlockSpec((None, O, NP), lambda b: (b, 0, 0)),
        compiler_params=pltpu.CompilerParams(
            dimension_semantics=("parallel",)),
    )(
        params["output_query"], x,
        params["q_ln_g"], params["q_ln_b"], params["kv_ln_g"], params["kv_ln_b"],
        params["wq"], params["bq"], params["wk"], params["bk"],
        params["wv"], params["bv"], params["wo"], params["bo"],
        params["mlp_ln_g"], params["mlp_ln_b"],
        params["w1"], params["b1"], params["w2"], params["b2"],
        params["w_head"], params["b_head"],
    )

    y = out[..., : params["num_classes"]]
    if O == 1:                       # torch.squeeze(dim=1) of the classification head
        y = jnp.squeeze(y, axis=1)
    return y


def init_params(key, *, num_latent_channels, num_output_queries,
                num_output_query_channels, num_heads, num_classes,
                widening_factor=1, init_scale=0.02):
    """Matches PerceiverDecoder._init_parameters: Linear weights ~ N(0, init_scale),
    biases zero, LayerNorm gamma=1/beta=0, output_query ~ N(0, init_scale).
    Linear weights are stored pre-transposed as (in, out)."""
    C = num_latent_channels
    F = num_output_query_channels
    QK = F                 # default num_qk_channels
    V = QK                 # default num_v_channels
    HID = widening_factor * F
    NP = _round_up(num_classes, 128)

    ks = jax.random.split(key, 8)
    nrm = lambda k, shape: init_scale * jax.random.normal(k, shape, jnp.float32)

    w_head = jnp.zeros((F, NP), jnp.float32).at[:, :num_classes].set(
        nrm(ks[7], (F, num_classes)))

    return dict(
        num_heads=num_heads, num_classes=num_classes,
        output_query=nrm(ks[0], (num_output_queries, F)),
        q_ln_g=jnp.ones((1, F), jnp.float32), q_ln_b=jnp.zeros((1, F), jnp.float32),
        kv_ln_g=jnp.ones((1, C), jnp.float32), kv_ln_b=jnp.zeros((1, C), jnp.float32),
        wq=nrm(ks[1], (F, QK)), bq=jnp.zeros((1, QK), jnp.float32),
        wk=nrm(ks[2], (C, QK)), bk=jnp.zeros((1, QK), jnp.float32),
        wv=nrm(ks[3], (C, V)), bv=jnp.zeros((1, V), jnp.float32),
        wo=nrm(ks[4], (V, F)), bo=jnp.zeros((1, F), jnp.float32),
        mlp_ln_g=jnp.ones((1, F), jnp.float32), mlp_ln_b=jnp.zeros((1, F), jnp.float32),
        w1=nrm(ks[5], (F, HID)), b1=jnp.zeros((1, HID), jnp.float32),
        w2=nrm(ks[6], (HID, F)), b2=jnp.zeros((1, F), jnp.float32),
        w_head=w_head, b_head=jnp.zeros((1, NP), jnp.float32),
    )


def reference_forward(x, params):
    """Pure-JAX reference of PerceiverDecoder.forward (same math as the kernel)."""
    B = x.shape[0]
    oq = params["output_query"]
    O, F = oq.shape
    H = int(params["num_heads"])
    oq_b = jnp.broadcast_to(oq, (B, O, F))

    q_in = _layer_norm(oq_b, params["q_ln_g"], params["q_ln_b"], 1e-5)
    kv_in = _layer_norm(x, params["kv_ln_g"], params["kv_ln_b"], 1e-5)

    q = q_in @ params["wq"] + params["bq"]
    k = kv_in @ params["wk"] + params["bk"]
    v = kv_in @ params["wv"] + params["bv"]

    def split_heads(t):
        b, n, d = t.shape
        return t.reshape(b, n, H, d // H).transpose(0, 2, 1, 3)   # (B, H, N, dh)

    qh, kh, vh = split_heads(q), split_heads(k), split_heads(v)
    dqk = params["wq"].shape[1] // H
    attn = jnp.einsum("bhic,bhjc->bhij", qh, kh) * (float(dqk) ** -0.5)
    attn = jax.nn.softmax(attn, axis=-1)
    ctx = jnp.einsum("bhij,bhjc->bhic", attn, vh)                 # (B, H, O, dv)
    ctx = ctx.transpose(0, 2, 1, 3).reshape(B, O, -1)             # (B, O, V)
    attn_out = ctx @ params["wo"] + params["bo"] + oq_b

    h_in = _layer_norm(attn_out, params["mlp_ln_g"], params["mlp_ln_b"], 1e-5)
    hid = _gelu_tanh(h_in @ params["w1"] + params["b1"])
    mlp_out = hid @ params["w2"] + params["b2"] + attn_out

    y = mlp_out @ params["w_head"] + params["b_head"]
    y = y[..., : params["num_classes"]]
    if O == 1:
        y = jnp.squeeze(y, axis=1)
    return y


if __name__ == "__main__":
    key = jax.random.PRNGKey(0)
    B, L = 2, 8               # batch, latent sequence length
    C_latent = 32             # num_latent_channels
    O, F = 1, 32              # num_output_queries, num_output_query_channels
    H = 4                     # num_cross_attention_heads
    num_classes = 16
    widening = 1              # cross_attention_widening_factor

    k_params, k_x = jax.random.split(key)
    params = init_params(
        k_params, num_latent_channels=C_latent, num_output_queries=O,
        num_output_query_channels=F, num_heads=H, num_classes=num_classes,
        widening_factor=widening)
    x = jax.random.normal(k_x, (B, L, C_latent), jnp.float32)

    out = perceiver_decoder_forward(x, params)
    out = jax.block_until_ready(out)

    ref = reference_forward(x, params)
    assert out.shape == (B, num_classes), out.shape
    assert jnp.allclose(out, ref, atol=1e-4, rtol=1e-4), (
        "mismatch vs reference, max abs diff = "
        + str(float(jnp.max(jnp.abs(out - ref)))))
    print("KERNEL_OK")
</pallas_src>

<mosaic_0001>
module attributes {stable_mosaic.version = 11 : i64} {
  func.func @_perceiver_decoder_kernel(%arg0: i32, %arg1: memref<1x32xf32, #tpu.memory_space<vmem>>, %arg2: memref<1x8x32xf32, #tpu.memory_space<vmem>>, %arg3: memref<1x32xf32, #tpu.memory_space<vmem>>, %arg4: memref<1x32xf32, #tpu.memory_space<vmem>>, %arg5: memref<1x32xf32, #tpu.memory_space<vmem>>, %arg6: memref<1x32xf32, #tpu.memory_space<vmem>>, %arg7: memref<32x32xf32, #tpu.memory_space<vmem>>, %arg8: memref<1x32xf32, #tpu.memory_space<vmem>>, %arg9: memref<32x32xf32, #tpu.memory_space<vmem>>, %arg10: memref<1x32xf32, #tpu.memory_space<vmem>>, %arg11: memref<32x32xf32, #tpu.memory_space<vmem>>, %arg12: memref<1x32xf32, #tpu.memory_space<vmem>>, %arg13: memref<32x32xf32, #tpu.memory_space<vmem>>, %arg14: memref<1x32xf32, #tpu.memory_space<vmem>>, %arg15: memref<1x32xf32, #tpu.memory_space<vmem>>, %arg16: memref<1x32xf32, #tpu.memory_space<vmem>>, %arg17: memref<32x32xf32, #tpu.memory_space<vmem>>, %arg18: memref<1x32xf32, #tpu.memory_space<vmem>>, %arg19: memref<32x32xf32, #tpu.memory_space<vmem>>, %arg20: memref<1x32xf32, #tpu.memory_space<vmem>>, %arg21: memref<32x128xf32, #tpu.memory_space<vmem>>, %arg22: memref<1x128xf32, #tpu.memory_space<vmem>>, %arg23: memref<1x1x128xf32, #tpu.memory_space<vmem>>) attributes {dimension_semantics = [#tpu.dimension_semantics<parallel>], iteration_bounds = array<i64: 2>, scalar_prefetch = 0 : i64, scratch_operands = 0 : i64, tpu.core_type = #tpu.core_type<tc>, window_params = [{pipeline_mode = #tpu.pipeline_mode<synchronous>, transform_indices = @transform_0, window_bounds = array<i64: 1, 32>}, {transform_indices = @transform_1, window_bounds = array<i64: 1, 8, 32>}, {pipeline_mode = #tpu.pipeline_mode<synchronous>, transform_indices = @transform_2, window_bounds = array<i64: 1, 32>}, {pipeline_mode = #tpu.pipeline_mode<synchronous>, transform_indices = @transform_3, window_bounds = array<i64: 1, 32>}, {pipeline_mode = #tpu.pipeline_mode<synchronous>, transform_indices = @transform_4, window_bounds = array<i64: 1, 32>}, {pipeline_mode = #tpu.pipeline_mode<synchronous>, transform_indices = @transform_5, window_bounds = array<i64: 1, 32>}, {pipeline_mode = #tpu.pipeline_mode<synchronous>, transform_indices = @transform_6, window_bounds = array<i64: 32, 32>}, {pipeline_mode = #tpu.pipeline_mode<synchronous>, transform_indices = @transform_7, window_bounds = array<i64: 1, 32>}, {pipeline_mode = #tpu.pipeline_mode<synchronous>, transform_indices = @transform_8, window_bounds = array<i64: 32, 32>}, {pipeline_mode = #tpu.pipeline_mode<synchronous>, transform_indices = @transform_9, window_bounds = array<i64: 1, 32>}, {pipeline_mode = #tpu.pipeline_mode<synchronous>, transform_indices = @transform_10, window_bounds = array<i64: 32, 32>}, {pipeline_mode = #tpu.pipeline_mode<synchronous>, transform_indices = @transform_11, window_bounds = array<i64: 1, 32>}, {pipeline_mode = #tpu.pipeline_mode<synchronous>, transform_indices = @transform_12, window_bounds = array<i64: 32, 32>}, {pipeline_mode = #tpu.pipeline_mode<synchronous>, transform_indices = @transform_13, window_bounds = array<i64: 1, 32>}, {pipeline_mode = #tpu.pipeline_mode<synchronous>, transform_indices = @transform_14, window_bounds = array<i64: 1, 32>}, {pipeline_mode = #tpu.pipeline_mode<synchronous>, transform_indices = @transform_15, window_bounds = array<i64: 1, 32>}, {pipeline_mode = #tpu.pipeline_mode<synchronous>, transform_indices = @transform_16, window_bounds = array<i64: 32, 32>}, {pipeline_mode = #tpu.pipeline_mode<synchronous>, transform_indices = @transform_17, window_bounds = array<i64: 1, 32>}, {pipeline_mode = #tpu.pipeline_mode<synchronous>, transform_indices = @transform_18, window_bounds = array<i64: 32, 32>}, {pipeline_mode = #tpu.pipeline_mode<synchronous>, transform_indices = @transform_19, window_bounds = array<i64: 1, 32>}, {pipeline_mode = #tpu.pipeline_mode<synchronous>, transform_indices = @transform_20, window_bounds = array<i64: 32, 128>}, {pipeline_mode = #tpu.pipeline_mode<synchronous>, transform_indices = @transform_21, window_bounds = array<i64: 1, 128>}, {transform_indices = @transform_22, window_bounds = array<i64: 1, 1, 128>}]} {
    %c0 = arith.constant 0 : index
    %c0_0 = arith.constant 0 : index
    %0 = vector.load %arg1[%c0, %c0_0] : memref<1x32xf32, #tpu.memory_space<vmem>>, vector<1x32xf32>
    %c0_1 = arith.constant 0 : index
    %c0_2 = arith.constant 0 : index
    %c0_3 = arith.constant 0 : index
    %1 = vector.load %arg2[%c0_1, %c0_2, %c0_3] : memref<1x8x32xf32, #tpu.memory_space<vmem>>, vector<1x8x32xf32>
    %2 = vector.shape_cast %1 : vector<1x8x32xf32> to vector<8x32xf32>
    %c0_4 = arith.constant 0 : index
    %c0_5 = arith.constant 0 : index
    %3 = vector.load %arg3[%c0_4, %c0_5] : memref<1x32xf32, #tpu.memory_space<vmem>>, vector<1x32xf32>
    %c0_6 = arith.constant 0 : index
    %c0_7 = arith.constant 0 : index
    %4 = vector.load %arg4[%c0_6, %c0_7] : memref<1x32xf32, #tpu.memory_space<vmem>>, vector<1x32xf32>
    %cst = arith.constant dense<0.000000e+00> : vector<1xf32>
    %5 = vector.multi_reduction <add>, %0, %cst [1] : vector<1x32xf32> to vector<1xf32>
    %6 = vector.shape_cast %5 : vector<1xf32> to vector<1x1xf32>
    %cst_8 = arith.constant 3.200000e+01 : f32
    %7 = vector.broadcast %cst_8 : f32 to vector<1x1xf32>
    %8 = arith.divf %6, %7 : vector<1x1xf32>
    %9 = vector.broadcast %8 : vector<1x1xf32> to vector<1x32xf32>
    %10 = arith.subf %0, %9 : vector<1x32xf32>
    %11 = arith.mulf %10, %10 : vector<1x32xf32>
    %cst_9 = arith.constant dense<0.000000e+00> : vector<1xf32>
    %12 = vector.multi_reduction <add>, %11, %cst_9 [1] : vector<1x32xf32> to vector<1xf32>
    %13 = vector.shape_cast %12 : vector<1xf32> to vector<1x1xf32>
    %cst_10 = arith.constant 3.200000e+01 : f32
    %14 = vector.broadcast %cst_10 : f32 to vector<1x1xf32>
    %15 = arith.divf %13, %14 : vector<1x1xf32>
    %16 = vector.broadcast %8 : vector<1x1xf32> to vector<1x32xf32>
    %17 = arith.subf %0, %16 : vector<1x32xf32>
    %cst_11 = arith.constant 9.99999974E-6 : f32
    %18 = vector.broadcast %cst_11 : f32 to vector<1x1xf32>
    %19 = arith.addf %15, %18 : vector<1x1xf32>
    %20 = math.rsqrt %19 : vector<1x1xf32>
    %21 = vector.broadcast %20 : vector<1x1xf32> to vector<1x32xf32>
    %22 = arith.mulf %17, %21 : vector<1x32xf32>
    %23 = arith.mulf %22, %3 : vector<1x32xf32>
    %24 = arith.addf %23, %4 : vector<1x32xf32>
    %c0_12 = arith.constant 0 : index
    %c0_13 = arith.constant 0 : index
    %25 = vector.load %arg5[%c0_12, %c0_13] : memref<1x32xf32, #tpu.memory_space<vmem>>, vector<1x32xf32>
    %c0_14 = arith.constant 0 : index
    %c0_15 = arith.constant 0 : index
    %26 = vector.load %arg6[%c0_14, %c0_15] : memref<1x32xf32, #tpu.memory_space<vmem>>, vector<1x32xf32>
    %cst_16 = arith.constant dense<0.000000e+00> : vector<8xf32>
    %27 = vector.multi_reduction <add>, %2, %cst_16 [1] : vector<8x32xf32> to vector<8xf32>
    %28 = vector.shape_cast %27 : vector<8xf32> to vector<8x1xf32>
    %cst_17 = arith.constant 3.200000e+01 : f32
    %29 = vector.broadcast %cst_17 : f32 to vector<8x1xf32>
    %30 = arith.divf %28, %29 : vector<8x1xf32>
    %31 = vector.broadcast %30 : vector<8x1xf32> to vector<8x32xf32>
    %32 = arith.subf %2, %31 : vector<8x32xf32>
    %33 = arith.mulf %32, %32 : vector<8x32xf32>
    %cst_18 = arith.constant dense<0.000000e+00> : vector<8xf32>
    %34 = vector.multi_reduction <add>, %33, %cst_18 [1] : vector<8x32xf32> to vector<8xf32>
    %35 = vector.shape_cast %34 : vector<8xf32> to vector<8x1xf32>
    %cst_19 = arith.constant 3.200000e+01 : f32
    %36 = vector.broadcast %cst_19 : f32 to vector<8x1xf32>
    %37 = arith.divf %35, %36 : vector<8x1xf32>
    %38 = vector.broadcast %30 : vector<8x1xf32> to vector<8x32xf32>
    %39 = arith.subf %2, %38 : vector<8x32xf32>
    %cst_20 = arith.constant 9.99999974E-6 : f32
    %40 = vector.broadcast %cst_20 : f32 to vector<8x1xf32>
    %41 = arith.addf %37, %40 : vector<8x1xf32>
    %42 = math.rsqrt %41 : vector<8x1xf32>
    %43 = vector.broadcast %42 : vector<8x1xf32> to vector<8x32xf32>
    %44 = arith.mulf %39, %43 : vector<8x32xf32>
    %45 = vector.broadcast %25 : vector<1x32xf32> to vector<8x32xf32>
    %46 = arith.mulf %44, %45 : vector<8x32xf32>
    %47 = vector.broadcast %26 : vector<1x32xf32> to vector<8x32xf32>
    %48 = arith.addf %46, %47 : vector<8x32xf32>
    %c0_21 = arith.constant 0 : index
    %c0_22 = arith.constant 0 : index
    %49 = vector.load %arg7[%c0_21, %c0_22] : memref<32x32xf32, #tpu.memory_space<vmem>>, vector<32x32xf32>
    %cst_23 = arith.constant dense<0.000000e+00> : vector<1x32xf32>
    %50 = tpu.matmul %24, %49, %cst_23 {dimension_numbers = #tpu.dot_dimension_numbers<[1], [0], [0], [1], [0, 0, 1, 1], [], []>} : vector<1x32xf32>, vector<32x32xf32>, vector<1x32xf32> -> vector<1x32xf32>
    %c0_24 = arith.constant 0 : index
    %c0_25 = arith.constant 0 : index
    %51 = vector.load %arg8[%c0_24, %c0_25] : memref<1x32xf32, #tpu.memory_space<vmem>>, vector<1x32xf32>
    %52 = arith.addf %50, %51 : vector<1x32xf32>
    %c0_26 = arith.constant 0 : index
    %c0_27 = arith.constant 0 : index
    %53 = vector.load %arg9[%c0_26, %c0_27] : memref<32x32xf32, #tpu.memory_space<vmem>>, vector<32x32xf32>
    %cst_28 = arith.constant dense<0.000000e+00> : vector<8x32xf32>
    %54 = tpu.matmul %48, %53, %cst_28 {dimension_numbers = #tpu.dot_dimension_numbers<[1], [0], [0], [1], [0, 0, 1, 1], [], []>} : vector<8x32xf32>, vector<32x32xf32>, vector<8x32xf32> -> vector<8x32xf32>
    %c0_29 = arith.constant 0 : index
    %c0_30 = arith.constant 0 : index
    %55 = vector.load %arg10[%c0_29, %c0_30] : memref<1x32xf32, #tpu.memory_space<vmem>>, vector<1x32xf32>
    %56 = vector.broadcast %55 : vector<1x32xf32> to vector<8x32xf32>
    %57 = arith.addf %54, %56 : vector<8x32xf32>
    %c0_31 = arith.constant 0 : index
    %c0_32 = arith.constant 0 : index
    %58 = vector.load %arg11[%c0_31, %c0_32] : memref<32x32xf32, #tpu.memory_space<vmem>>, vector<32x32xf32>
    %cst_33 = arith.constant dense<0.000000e+00> : vector<8x32xf32>
    %59 = tpu.matmul %48, %58, %cst_33 {dimension_numbers = #tpu.dot_dimension_numbers<[1], [0], [0], [1], [0, 0, 1, 1], [], []>} : vector<8x32xf32>, vector<32x32xf32>, vector<8x32xf32> -> vector<8x32xf32>
    %c0_34 = arith.constant 0 : index
    %c0_35 = arith.constant 0 : index
    %60 = vector.load %arg12[%c0_34, %c0_35] : memref<1x32xf32, #tpu.memory_space<vmem>>, vector<1x32xf32>
    %61 = vector.broadcast %60 : vector<1x32xf32> to vector<8x32xf32>
    %62 = arith.addf %59, %61 : vector<8x32xf32>
    %cst_36 = arith.constant 0.000000e+00 : f32
    %63 = vector.broadcast %cst_36 : f32 to vector<1x32xf32>
    %64 = vector.extract_strided_slice %52 {offsets = [0, 0], sizes = [1, 8], strides = [1, 1]} : vector<1x32xf32> to vector<1x8xf32>
    %65 = vector.extract_strided_slice %57 {offsets = [0, 0], sizes = [8, 8], strides = [1, 1]} : vector<8x32xf32> to vector<8x8xf32>
    %66 = vector.extract_strided_slice %62 {offsets = [0, 0], sizes = [8, 8], strides = [1, 1]} : vector<8x32xf32> to vector<8x8xf32>
    %cst_37 = arith.constant dense<0.000000e+00> : vector<1x8xf32>
    %67 = tpu.matmul %64, %65, %cst_37 {dimension_numbers = #tpu.dot_dimension_numbers<[1], [1], [0], [0], [0, 0, 1, 0], [], []>} : vector<1x8xf32>, vector<8x8xf32>, vector<1x8xf32> -> vector<1x8xf32>
    %cst_38 = arith.constant 0.353553385 : f32
    %68 = vector.broadcast %cst_38 : f32 to vector<1x8xf32>
    %69 = arith.mulf %67, %68 : vector<1x8xf32>
    %cst_39 = arith.constant dense<0xFF800000> : vector<1xf32>
    %70 = vector.multi_reduction <maximumf>, %69, %cst_39 [1] : vector<1x8xf32> to vector<1xf32>
    %71 = vector.shape_cast %70 : vector<1xf32> to vector<1x1xf32>
    %72 = vector.broadcast %71 : vector<1x1xf32> to vector<1x8xf32>
    %73 = arith.subf %69, %72 : vector<1x8xf32>
    %74 = math.exp %73 : vector<1x8xf32>
    %cst_40 = arith.constant dense<0.000000e+00> : vector<1xf32>
    %75 = vector.multi_reduction <add>, %74, %cst_40 [1] : vector<1x8xf32> to vector<1xf32>
    %76 = vector.shape_cast %75 : vector<1xf32> to vector<1x1xf32>
    %77 = vector.broadcast %76 : vector<1x1xf32> to vector<1x8xf32>
    %78 = arith.divf %74, %77 : vector<1x8xf32>
    %cst_41 = arith.constant dense<0.000000e+00> : vector<1x8xf32>
    %79 = tpu.matmul %78, %66, %cst_41 {dimension_numbers = #tpu.dot_dimension_numbers<[1], [0], [0], [1], [0, 0, 1, 1], [], []>} : vector<1x8xf32>, vector<8x8xf32>, vector<1x8xf32> -> vector<1x8xf32>
    %c0_42 = arith.constant 0 : index
    %c0_43 = arith.constant 0 : index
    %80 = vector.load %arg13[%c0_42, %c0_43] : memref<32x32xf32, #tpu.memory_space<vmem>>, vector<8x32xf32>
    %cst_44 = arith.constant dense<0.000000e+00> : vector<1x32xf32>
    %81 = tpu.matmul %79, %80, %cst_44 {dimension_numbers = #tpu.dot_dimension_numbers<[1], [0], [0], [1], [0, 0, 1, 1], [], []>} : vector<1x8xf32>, vector<8x32xf32>, vector<1x32xf32> -> vector<1x32xf32>
    %82 = arith.addf %63, %81 : vector<1x32xf32>
    %83 = vector.extract_strided_slice %52 {offsets = [0, 8], sizes = [1, 8], strides = [1, 1]} : vector<1x32xf32> to vector<1x8xf32>
    %84 = vector.extract_strided_slice %57 {offsets = [0, 8], sizes = [8, 8], strides = [1, 1]} : vector<8x32xf32> to vector<8x8xf32>
    %85 = vector.extract_strided_slice %62 {offsets = [0, 8], sizes = [8, 8], strides = [1, 1]} : vector<8x32xf32> to vector<8x8xf32>
    %cst_45 = arith.constant dense<0.000000e+00> : vector<1x8xf32>
    %86 = tpu.matmul %83, %84, %cst_45 {dimension_numbers = #tpu.dot_dimension_numbers<[1], [1], [0], [0], [0, 0, 1, 0], [], []>} : vector<1x8xf32>, vector<8x8xf32>, vector<1x8xf32> -> vector<1x8xf32>
    %cst_46 = arith.constant 0.353553385 : f32
    %87 = vector.broadcast %cst_46 : f32 to vector<1x8xf32>
    %88 = arith.mulf %86, %87 : vector<1x8xf32>
    %cst_47 = arith.constant dense<0xFF800000> : vector<1xf32>
    %89 = vector.multi_reduction <maximumf>, %88, %cst_47 [1] : vector<1x8xf32> to vector<1xf32>
    %90 = vector.shape_cast %89 : vector<1xf32> to vector<1x1xf32>
    %91 = vector.broadcast %90 : vector<1x1xf32> to vector<1x8xf32>
    %92 = arith.subf %88, %91 : vector<1x8xf32>
    %93 = math.exp %92 : vector<1x8xf32>
    %cst_48 = arith.constant dense<0.000000e+00> : vector<1xf32>
    %94 = vector.multi_reduction <add>, %93, %cst_48 [1] : vector<1x8xf32> to vector<1xf32>
    %95 = vector.shape_cast %94 : vector<1xf32> to vector<1x1xf32>
    %96 = vector.broadcast %95 : vector<1x1xf32> to vector<1x8xf32>
    %97 = arith.divf %93, %96 : vector<1x8xf32>
    %cst_49 = arith.constant dense<0.000000e+00> : vector<1x8xf32>
    %98 = tpu.matmul %97, %85, %cst_49 {dimension_numbers = #tpu.dot_dimension_numbers<[1], [0], [0], [1], [0, 0, 1, 1], [], []>} : vector<1x8xf32>, vector<8x8xf32>, vector<1x8xf32> -> vector<1x8xf32>
    %c8 = arith.constant 8 : index
    %c0_50 = arith.constant 0 : index
    %99 = vector.load %arg13[%c8, %c0_50] : memref<32x32xf32, #tpu.memory_space<vmem>>, vector<8x32xf32>
    %cst_51 = arith.constant dense<0.000000e+00> : vector<1x32xf32>
    %100 = tpu.matmul %98, %99, %cst_51 {dimension_numbers = #tpu.dot_dimension_numbers<[1], [0], [0], [1], [0, 0, 1, 1], [], []>} : vector<1x8xf32>, vector<8x32xf32>, vector<1x32xf32> -> vector<1x32xf32>
    %101 = arith.addf %82, %100 : vector<1x32xf32>
    %102 = vector.extract_strided_slice %52 {offsets = [0, 16], sizes = [1, 8], strides = [1, 1]} : vector<1x32xf32> to vector<1x8xf32>
    %103 = vector.extract_strided_slice %57 {offsets = [0, 16], sizes = [8, 8], strides = [1, 1]} : vector<8x32xf32> to vector<8x8xf32>
    %104 = vector.extract_strided_slice %62 {offsets = [0, 16], sizes = [8, 8], strides = [1, 1]} : vector<8x32xf32> to vector<8x8xf32>
    %cst_52 = arith.constant dense<0.000000e+00> : vector<1x8xf32>
    %105 = tpu.matmul %102, %103, %cst_52 {dimension_numbers = #tpu.dot_dimension_numbers<[1], [1], [0], [0], [0, 0, 1, 0], [], []>} : vector<1x8xf32>, vector<8x8xf32>, vector<1x8xf32> -> vector<1x8xf32>
    %cst_53 = arith.constant 0.353553385 : f32
    %106 = vector.broadcast %cst_53 : f32 to vector<1x8xf32>
    %107 = arith.mulf %105, %106 : vector<1x8xf32>
    %cst_54 = arith.constant dense<0xFF800000> : vector<1xf32>
    %108 = vector.multi_reduction <maximumf>, %107, %cst_54 [1] : vector<1x8xf32> to vector<1xf32>
    %109 = vector.shape_cast %108 : vector<1xf32> to vector<1x1xf32>
    %110 = vector.broadcast %109 : vector<1x1xf32> to vector<1x8xf32>
    %111 = arith.subf %107, %110 : vector<1x8xf32>
    %112 = math.exp %111 : vector<1x8xf32>
    %cst_55 = arith.constant dense<0.000000e+00> : vector<1xf32>
    %113 = vector.multi_reduction <add>, %112, %cst_55 [1] : vector<1x8xf32> to vector<1xf32>
    %114 = vector.shape_cast %113 : vector<1xf32> to vector<1x1xf32>
    %115 = vector.broadcast %114 : vector<1x1xf32> to vector<1x8xf32>
    %116 = arith.divf %112, %115 : vector<1x8xf32>
    %cst_56 = arith.constant dense<0.000000e+00> : vector<1x8xf32>
    %117 = tpu.matmul %116, %104, %cst_56 {dimension_numbers = #tpu.dot_dimension_numbers<[1], [0], [0], [1], [0, 0, 1, 1], [], []>} : vector<1x8xf32>, vector<8x8xf32>, vector<1x8xf32> -> vector<1x8xf32>
    %c16 = arith.constant 16 : index
    %c0_57 = arith.constant 0 : index
    %118 = vector.load %arg13[%c16, %c0_57] : memref<32x32xf32, #tpu.memory_space<vmem>>, vector<8x32xf32>
    %cst_58 = arith.constant dense<0.000000e+00> : vector<1x32xf32>
    %119 = tpu.matmul %117, %118, %cst_58 {dimension_numbers = #tpu.dot_dimension_numbers<[1], [0], [0], [1], [0, 0, 1, 1], [], []>} : vector<1x8xf32>, vector<8x32xf32>, vector<1x32xf32> -> vector<1x32xf32>
    %120 = arith.addf %101, %119 : vector<1x32xf32>
    %121 = vector.extract_strided_slice %52 {offsets = [0, 24], sizes = [1, 8], strides = [1, 1]} : vector<1x32xf32> to vector<1x8xf32>
    %122 = vector.extract_strided_slice %57 {offsets = [0, 24], sizes = [8, 8], strides = [1, 1]} : vector<8x32xf32> to vector<8x8xf32>
    %123 = vector.extract_strided_slice %62 {offsets = [0, 24], sizes = [8, 8], strides = [1, 1]} : vector<8x32xf32> to vector<8x8xf32>
    %cst_59 = arith.constant dense<0.000000e+00> : vector<1x8xf32>
    %124 = tpu.matmul %121, %122, %cst_59 {dimension_numbers = #tpu.dot_dimension_numbers<[1], [1], [0], [0], [0, 0, 1, 0], [], []>} : vector<1x8xf32>, vector<8x8xf32>, vector<1x8xf32> -> vector<1x8xf32>
    %cst_60 = arith.constant 0.353553385 : f32
    %125 = vector.broadcast %cst_60 : f32 to vector<1x8xf32>
    %126 = arith.mulf %124, %125 : vector<1x8xf32>
    %cst_61 = arith.constant dense<0xFF800000> : vector<1xf32>
    %127 = vector.multi_reduction <maximumf>, %126, %cst_61 [1] : vector<1x8xf32> to vector<1xf32>
    %128 = vector.shape_cast %127 : vector<1xf32> to vector<1x1xf32>
    %129 = vector.broadcast %128 : vector<1x1xf32> to vector<1x8xf32>
    %130 = arith.subf %126, %129 : vector<1x8xf32>
    %131 = math.exp %130 : vector<1x8xf32>
    %cst_62 = arith.constant dense<0.000000e+00> : vector<1xf32>
    %132 = vector.multi_reduction <add>, %131, %cst_62 [1] : vector<1x8xf32> to vector<1xf32>
    %133 = vector.shape_cast %132 : vector<1xf32> to vector<1x1xf32>
    %134 = vector.broadcast %133 : vector<1x1xf32> to vector<1x8xf32>
    %135 = arith.divf %131, %134 : vector<1x8xf32>
    %cst_63 = arith.constant dense<0.000000e+00> : vector<1x8xf32>
    %136 = tpu.matmul %135, %123, %cst_63 {dimension_numbers = #tpu.dot_dimension_numbers<[1], [0], [0], [1], [0, 0, 1, 1], [], []>} : vector<1x8xf32>, vector<8x8xf32>, vector<1x8xf32> -> vector<1x8xf32>
    %c24 = arith.constant 24 : index
    %c0_64 = arith.constant 0 : index
    %137 = vector.load %arg13[%c24, %c0_64] : memref<32x32xf32, #tpu.memory_space<vmem>>, vector<8x32xf32>
    %cst_65 = arith.constant dense<0.000000e+00> : vector<1x32xf32>
    %138 = tpu.matmul %136, %137, %cst_65 {dimension_numbers = #tpu.dot_dimension_numbers<[1], [0], [0], [1], [0, 0, 1, 1], [], []>} : vector<1x8xf32>, vector<8x32xf32>, vector<1x32xf32> -> vector<1x32xf32>
    %139 = arith.addf %120, %138 : vector<1x32xf32>
    %c0_66 = arith.constant 0 : index
    %c0_67 = arith.constant 0 : index
    %140 = vector.load %arg14[%c0_66, %c0_67] : memref<1x32xf32, #tpu.memory_space<vmem>>, vector<1x32xf32>
    %141 = arith.addf %139, %140 : vector<1x32xf32>
    %142 = arith.addf %141, %0 : vector<1x32xf32>
    %c0_68 = arith.constant 0 : index
    %c0_69 = arith.constant 0 : index
    %143 = vector.load %arg15[%c0_68, %c0_69] : memref<1x32xf32, #tpu.memory_space<vmem>>, vector<1x32xf32>
    %c0_70 = arith.constant 0 : index
    %c0_71 = arith.constant 0 : index
    %144 = vector.load %arg16[%c0_70, %c0_71] : memref<1x32xf32, #tpu.memory_space<vmem>>, vector<1x32xf32>
    %cst_72 = arith.constant dense<0.000000e+00> : vector<1xf32>
    %145 = vector.multi_reduction <add>, %142, %cst_72 [1] : vector<1x32xf32> to vector<1xf32>
    %146 = vector.shape_cast %145 : vector<1xf32> to vector<1x1xf32>
    %cst_73 = arith.constant 3.200000e+01 : f32
    %147 = vector.broadcast %cst_73 : f32 to vector<1x1xf32>
    %148 = arith.divf %146, %147 : vector<1x1xf32>
    %149 = vector.broadcast %148 : vector<1x1xf32> to vector<1x32xf32>
    %150 = arith.subf %142, %149 : vector<1x32xf32>
    %151 = arith.mulf %150, %150 : vector<1x32xf32>
    %cst_74 = arith.constant dense<0.000000e+00> : vector<1xf32>
    %152 = vector.multi_reduction <add>, %151, %cst_74 [1] : vector<1x32xf32> to vector<1xf32>
    %153 = vector.shape_cast %152 : vector<1xf32> to vector<1x1xf32>
    %cst_75 = arith.constant 3.200000e+01 : f32
    %154 = vector.broadcast %cst_75 : f32 to vector<1x1xf32>
    %155 = arith.divf %153, %154 : vector<1x1xf32>
    %156 = vector.broadcast %148 : vector<1x1xf32> to vector<1x32xf32>
    %157 = arith.subf %142, %156 : vector<1x32xf32>
    %cst_76 = arith.constant 9.99999974E-6 : f32
    %158 = vector.broadcast %cst_76 : f32 to vector<1x1xf32>
    %159 = arith.addf %155, %158 : vector<1x1xf32>
    %160 = math.rsqrt %159 : vector<1x1xf32>
    %161 = vector.broadcast %160 : vector<1x1xf32> to vector<1x32xf32>
    %162 = arith.mulf %157, %161 : vector<1x32xf32>
    %163 = arith.mulf %162, %143 : vector<1x32xf32>
    %164 = arith.addf %163, %144 : vector<1x32xf32>
    %c0_77 = arith.constant 0 : index
    %c0_78 = arith.constant 0 : index
    %165 = vector.load %arg17[%c0_77, %c0_78] : memref<32x32xf32, #tpu.memory_space<vmem>>, vector<32x32xf32>
    %cst_79 = arith.constant dense<0.000000e+00> : vector<1x32xf32>
    %166 = tpu.matmul %164, %165, %cst_79 {dimension_numbers = #tpu.dot_dimension_numbers<[1], [0], [0], [1], [0, 0, 1, 1], [], []>} : vector<1x32xf32>, vector<32x32xf32>, vector<1x32xf32> -> vector<1x32xf32>
    %c0_80 = arith.constant 0 : index
    %c0_81 = arith.constant 0 : index
    %167 = vector.load %arg18[%c0_80, %c0_81] : memref<1x32xf32, #tpu.memory_space<vmem>>, vector<1x32xf32>
    %168 = arith.addf %166, %167 : vector<1x32xf32>
    %cst_82 = arith.constant 5.000000e-01 : f32
    %169 = vector.broadcast %cst_82 : f32 to vector<1x32xf32>
    %170 = arith.mulf %169, %168 : vector<1x32xf32>
    %cst_83 = arith.constant 4.471500e-02 : f32
    %171 = vector.broadcast %cst_83 : f32 to vector<1x32xf32>
    %172 = arith.mulf %171, %168 : vector<1x32xf32>
    %173 = arith.mulf %172, %168 : vector<1x32xf32>
    %174 = arith.mulf %173, %168 : vector<1x32xf32>
    %175 = arith.addf %168, %174 : vector<1x32xf32>
    %cst_84 = arith.constant 0.797884583 : f32
    %176 = vector.broadcast %cst_84 : f32 to vector<1x32xf32>
    %177 = arith.mulf %176, %175 : vector<1x32xf32>
    %178 = math.tanh %177 : vector<1x32xf32>
    %cst_85 = arith.constant 1.000000e+00 : f32
    %179 = vector.broadcast %cst_85 : f32 to vector<1x32xf32>
    %180 = arith.addf %179, %178 : vector<1x32xf32>
    %181 = arith.mulf %170, %180 : vector<1x32xf32>
    %c0_86 = arith.constant 0 : index
    %c0_87 = arith.constant 0 : index
    %182 = vector.load %arg19[%c0_86, %c0_87] : memref<32x32xf32, #tpu.memory_space<vmem>>, vector<32x32xf32>
    %cst_88 = arith.constant dense<0.000000e+00> : vector<1x32xf32>
    %183 = tpu.matmul %181, %182, %cst_88 {dimension_numbers = #tpu.dot_dimension_numbers<[1], [0], [0], [1], [0, 0, 1, 1], [], []>} : vector<1x32xf32>, vector<32x32xf32>, vector<1x32xf32> -> vector<1x32xf32>
    %c0_89 = arith.constant 0 : index
    %c0_90 = arith.constant 0 : index
    %184 = vector.load %arg20[%c0_89, %c0_90] : memref<1x32xf32, #tpu.memory_space<vmem>>, vector<1x32xf32>
    %185 = arith.addf %183, %184 : vector<1x32xf32>
    %186 = arith.addf %185, %142 : vector<1x32xf32>
    %c0_91 = arith.constant 0 : index
    %c0_92 = arith.constant 0 : index
    %187 = vector.load %arg21[%c0_91, %c0_92] : memref<32x128xf32, #tpu.memory_space<vmem>>, vector<32x128xf32>
    %cst_93 = arith.constant dense<0.000000e+00> : vector<1x128xf32>
    %188 = tpu.matmul %186, %187, %cst_93 {dimension_numbers = #tpu.dot_dimension_numbers<[1], [0], [0], [1], [0, 0, 1, 1], [], []>} : vector<1x32xf32>, vector<32x128xf32>, vector<1x128xf32> -> vector<1x128xf32>
    %c0_94 = arith.constant 0 : index
    %c0_95 = arith.constant 0 : index
    %189 = vector.load %arg22[%c0_94, %c0_95] : memref<1x128xf32, #tpu.memory_space<vmem>>, vector<1x128xf32>
    %190 = arith.addf %188, %189 : vector<1x128xf32>
    %c0_96 = arith.constant 0 : index
    %c0_97 = arith.constant 0 : index
    %c0_98 = arith.constant 0 : index
    %191 = vector.load %arg23[%c0_96, %c0_97, %c0_98] : memref<1x1x128xf32, #tpu.memory_space<vmem>>, vector<1x1x128xf32>
    %192 = vector.shape_cast %191 : vector<1x1x128xf32> to vector<1x128xf32>
    %193 = vector.shape_cast %190 : vector<1x128xf32> to vector<1x1x128xf32>
    tpu.vector_store %arg23[%c0_96, %c0_97, %c0_98], %193 {strides = array<i32>} : memref<1x1x128xf32, #tpu.memory_space<vmem>>, vector<1x1x128xf32>,
    return
  }
  func.func @transform_0(%arg0: i32) -> (i32, i32) {
    %c0_i32 = arith.constant 0 : i32
    %c0_i32_0 = arith.constant 0 : i32
    %c0_i32_1 = arith.constant 0 : i32
    return %c0_i32, %c0_i32_0 : i32, i32
  }
  func.func @transform_1(%arg0: i32) -> (i32, i32, i32) {
    %c0_i32 = arith.constant 0 : i32
    %c0_i32_0 = arith.constant 0 : i32
    %c0_i32_1 = arith.constant 0 : i32
    return %arg0, %c0_i32, %c0_i32_0 : i32, i32, i32
  }
  func.func @transform_2(%arg0: i32) -> (i32, i32) {
    %c0_i32 = arith.constant 0 : i32
    %c0_i32_0 = arith.constant 0 : i32
    %c0_i32_1 = arith.constant 0 : i32
    return %c0_i32, %c0_i32_0 : i32, i32
  }
  func.func @transform_3(%arg0: i32) -> (i32, i32) {
    %c0_i32 = arith.constant 0 : i32
    %c0_i32_0 = arith.constant 0 : i32
    %c0_i32_1 = arith.constant 0 : i32
    return %c0_i32, %c0_i32_0 : i32, i32
  }
  func.func @transform_4(%arg0: i32) -> (i32, i32) {
    %c0_i32 = arith.constant 0 : i32
    %c0_i32_0 = arith.constant 0 : i32
    %c0_i32_1 = arith.constant 0 : i32
    return %c0_i32, %c0_i32_0 : i32, i32
  }
  func.func @transform_5(%arg0: i32) -> (i32, i32) {
    %c0_i32 = arith.constant 0 : i32
    %c0_i32_0 = arith.constant 0 : i32
    %c0_i32_1 = arith.constant 0 : i32
    return %c0_i32, %c0_i32_0 : i32, i32
  }
  func.func @transform_6(%arg0: i32) -> (i32, i32) {
    %c0_i32 = arith.constant 0 : i32
    %c0_i32_0 = arith.constant 0 : i32
    %c0_i32_1 = arith.constant 0 : i32
    return %c0_i32, %c0_i32_0 : i32, i32
  }
  func.func @transform_7(%arg0: i32) -> (i32, i32) {
    %c0_i32 = arith.constant 0 : i32
    %c0_i32_0 = arith.constant 0 : i32
    %c0_i32_1 = arith.constant 0 : i32
    return %c0_i32, %c0_i32_0 : i32, i32
  }
  func.func @transform_8(%arg0: i32) -> (i32, i32) {
    %c0_i32 = arith.constant 0 : i32
    %c0_i32_0 = arith.constant 0 : i32
    %c0_i32_1 = arith.constant 0 : i32
    return %c0_i32, %c0_i32_0 : i32, i32
  }
  func.func @transform_9(%arg0: i32) -> (i32, i32) {
    %c0_i32 = arith.constant 0 : i32
    %c0_i32_0 = arith.constant 0 : i32
    %c0_i32_1 = arith.constant 0 : i32
    return %c0_i32, %c0_i32_0 : i32, i32
  }
  func.func @transform_10(%arg0: i32) -> (i32, i32) {
    %c0_i32 = arith.constant 0 : i32
    %c0_i32_0 = arith.constant 0 : i32
    %c0_i32_1 = arith.constant 0 : i32
    return %c0_i32, %c0_i32_0 : i32, i32
  }
  func.func @transform_11(%arg0: i32) -> (i32, i32) {
    %c0_i32 = arith.constant 0 : i32
    %c0_i32_0 = arith.constant 0 : i32
    %c0_i32_1 = arith.constant 0 : i32
    return %c0_i32, %c0_i32_0 : i32, i32
  }
  func.func @transform_12(%arg0: i32) -> (i32, i32) {
    %c0_i32 = arith.constant 0 : i32
    %c0_i32_0 = arith.constant 0 : i32
    %c0_i32_1 = arith.constant 0 : i32
    return %c0_i32, %c0_i32_0 : i32, i32
  }
  func.func @transform_13(%arg0: i32) -> (i32, i32) {
    %c0_i32 = arith.constant 0 : i32
    %c0_i32_0 = arith.constant 0 : i32
    %c0_i32_1 = arith.constant 0 : i32
    return %c0_i32, %c0_i32_0 : i32, i32
  }
  func.func @transform_14(%arg0: i32) -> (i32, i32) {
    %c0_i32 = arith.constant 0 : i32
    %c0_i32_0 = arith.constant 0 : i32
    %c0_i32_1 = arith.constant 0 : i32
    return %c0_i32, %c0_i32_0 : i32, i32
  }
  func.func @transform_15(%arg0: i32) -> (i32, i32) {
    %c0_i32 = arith.constant 0 : i32
    %c0_i32_0 = arith.constant 0 : i32
    %c0_i32_1 = arith.constant 0 : i32
    return %c0_i32, %c0_i32_0 : i32, i32
  }
  func.func @transform_16(%arg0: i32) -> (i32, i32) {
    %c0_i32 = arith.constant 0 : i32
    %c0_i32_0 = arith.constant 0 : i32
    %c0_i32_1 = arith.constant 0 : i32
    return %c0_i32, %c0_i32_0 : i32, i32
  }
  func.func @transform_17(%arg0: i32) -> (i32, i32) {
    %c0_i32 = arith.constant 0 : i32
    %c0_i32_0 = arith.constant 0 : i32
    %c0_i32_1 = arith.constant 0 : i32
    return %c0_i32, %c0_i32_0 : i32, i32
  }
  func.func @transform_18(%arg0: i32) -> (i32, i32) {
    %c0_i32 = arith.constant 0 : i32
    %c0_i32_0 = arith.constant 0 : i32
    %c0_i32_1 = arith.constant 0 : i32
    return %c0_i32, %c0_i32_0 : i32, i32
  }
  func.func @transform_19(%arg0: i32) -> (i32, i32) {
    %c0_i32 = arith.constant 0 : i32
    %c0_i32_0 = arith.constant 0 : i32
    %c0_i32_1 = arith.constant 0 : i32
    return %c0_i32, %c0_i32_0 : i32, i32
  }
  func.func @transform_20(%arg0: i32) -> (i32, i32) {
    %c0_i32 = arith.constant 0 : i32
    %c0_i32_0 = arith.constant 0 : i32
    %c0_i32_1 = arith.constant 0 : i32
    return %c0_i32, %c0_i32_0 : i32, i32
  }
  func.func @transform_21(%arg0: i32) -> (i32, i32) {
    %c0_i32 = arith.constant 0 : i32
    %c0_i32_0 = arith.constant 0 : i32
    %c0_i32_1 = arith.constant 0 : i32
    return %c0_i32, %c0_i32_0 : i32, i32
  }
  func.func @transform_22(%arg0: i32) -> (i32, i32, i32) {
    %c0_i32 = arith.constant 0 : i32
    %c0_i32_0 = arith.constant 0 : i32
    %c0_i32_1 = arith.constant 0 : i32
    return %arg0, %c0_i32, %c0_i32_0 : i32, i32, i32
  }
}

</mosaic_0001>

<bundles_post_ra>
// kernel: tpu_custom_call.1
= control target key start
LH: loop header
LB: loop body
LE: loop exit
PB: predicated region body
PF: predicated region fallthrough
CT: control target
= control target key end

     0   :  { %s4700_s0 = inlined_call_operand.hbm [shape: f32[1,32], index: 0, kind: input, shape index: {}]   ;;  %s4701_s1 = inlined_call_operand.hbm [shape: f32[2,8,32], index: 1, kind: input, shape index: {}]   ;;  %s4702_s2 = inlined_call_operand.hbm [shape: f32[1,32], index: 2, kind: input, shape index: {}]   ;;  %s4703_s3 = inlined_call_operand.hbm [shape: f32[1,32], index: 3, kind: input, shape index: {}]   ;;  %s4704_s4 = inlined_call_operand.hbm [shape: f32[1,32], index: 4, kind: input, shape index: {}]   ;;  %s4705_s5 = inlined_call_operand.hbm [shape: f32[1,32], index: 5, kind: input, shape index: {}]   ;;  %s4706_s6 = inlined_call_operand.hbm [shape: f32[32,32], index: 6, kind: input, shape index: {}]   ;;  %s4707_s7 = inlined_call_operand.hbm [shape: f32[1,32], index: 7, kind: input, shape index: {}]   ;;  %s4708_s8 = inlined_call_operand.hbm [shape: f32[32,32], index: 8, kind: input, shape index: {}]   ;;  %s4709_s9 = inlined_call_operand.hbm [shape: f32[1,32], index: 9, kind: input, shape index: {}]   ;;  %s4710_s10 = inlined_call_operand.vmem [shape: f32[32,32], index: 10, kind: input, shape index: {}]   ;;  %s4711_s11 = inlined_call_operand.hbm [shape: f32[1,32], index: 11, kind: input, shape index: {}]   ;;  %s4712_s12 = inlined_call_operand.hbm [shape: f32[32,32], index: 12, kind: input, shape index: {}]   ;;  %s4713_s13 = inlined_call_operand.hbm [shape: f32[1,32], index: 13, kind: input, shape index: {}]   ;;  %s4714_s14 = inlined_call_operand.hbm [shape: f32[1,32], index: 14, kind: input, shape index: {}]   ;;  %s4715_s15 = inlined_call_operand.hbm [shape: f32[1,32], index: 15, kind: input, shape index: {}]   ;;  %s4716_s16 = inlined_call_operand.hbm [shape: f32[32,32], index: 16, kind: input, shape index: {}]   ;;  %s4717_s17 = inlined_call_operand.hbm [shape: f32[1,32], index: 17, kind: input, shape index: {}]   ;;  %s4718_s18 = inlined_call_operand.vmem [shape: f32[32,32], index: 18, kind: input, shape index: {}]   ;;  %s4719_s19 = inlined_call_operand.vmem [shape: f32[1,32], index: 19, kind: input, shape index: {}]   ;;  %s4720_s20 = inlined_call_operand.hbm [shape: f32[32,128], index: 20, kind: input, shape index: {}]   ;;  %s4721_s21 = inlined_call_operand.vmem [shape: f32[1,128], index: 21, kind: input, shape index: {}]   ;;  %s4722_s22 = inlined_call_operand.hbm [shape: f32[2,1,128], index: 22, kind: output, shape index: {}]  }
   0x1   :  { %4750 = sst [smem:[#allocation47_spill]] %s4700_s0 }
   0x2   :  { %4751 = sst [smem:[#allocation48_spill]] %s4701_s1 }
   0x3   :  { %4752 = sst [smem:[#allocation49_spill]] %s4702_s2 }
   0x4   :  { %4753 = sst [smem:[#allocation50_spill]] %s4703_s3 }
   0x5   :  { %4754 = sst [smem:[#allocation51_spill]] %s4704_s4 }
   0x6   :  { %4755 = sst [smem:[#allocation52_spill]] %s4705_s5 }
   0x7   :  { %4756 = sst [smem:[#allocation53_spill]] %s4706_s6 }
   0x8   :  { %4757 = sst [smem:[#allocation54_spill]] %s4707_s7 }
   0x9   :  { %4758 = sst [smem:[#allocation55_spill]] %s4709_s9 }
   0xa   :  { %4759 = sst [smem:[#allocation56_spill]] %s4710_s10 }
   0xb   :  { %4760 = sst [smem:[#allocation57_spill]] %s4712_s12 }
   0xc   :  { %4761 = sst [smem:[#allocation58_spill]] %s4718_s18 }
   0xd   :  { %4762 = sst [smem:[#allocation59_spill]] %s4719_s19 }
   0xe   :  { %4763 = sst [smem:[#allocation60_spill]] %s4721_s21 }
   0xf   :  { %4764 = sst [smem:[#allocation61_spill]] %s4722_s22 }
  0x10   :  { %27 = vsyncpa [#allocation3], 0 }
  0x11   :  { %28 = vsyncpa [#allocation6], 0 }
  0x12   :  { %30 = vsyncpa [#allocation6 + $0x1], 0 }
  0x13   :  { %31 = vsyncpa [#allocation9], 0 }
  0x14   :  { %32 = vsyncpa [#allocation12], 0 }
  0x15   :  { %33 = vsyncpa [#allocation15], 0 }
  0x16   :  { %34 = vsyncpa [#allocation18], 0 }
  0x17   :  { %35 = vsyncpa [#allocation21], 0 }
  0x18   :  { %36 = vsyncpa [#allocation24], 0 }
  0x19   :  { %37 = vsyncpa [#allocation27], 0 }
  0x1a   :  { %38 = vsyncpa [#allocation30], 0 }
  0x1b   :  { %39 = vsyncpa [#allocation4], 0 }
  0x1c   :  { %41 = vsyncpa [#allocation4 + $0x1], 0  ;;  %s3974_s3 = smov 0   ;;  %s3976_s28 = smov 0  }
  0x1d   :  { %s3978_s29 = smov 0   ;;  %s3980_s30 = smov 0  }
  0x1e LB: > { %4765 = sst [smem:[#allocation44_spill]] %s3818_s3  ;;  %s3832_s4 = smov [#allocation7]   ;;  %s3830_s30 = sphi %s3980_s30, %s4825_s30   ;;  %s3826_s29 = sphi %s3978_s29, %s4824_s29   ;;  %s3822_s28 = sphi %s3976_s28, %s4823_s28   ;;  %s3818_s3 = sphi %s3974_s3, %s4822_s3  }
  0x1f   : > { %s569_s0 = sshll.u32 %s3832_s4, 4  ;;  %s3995_s23 = sadd.s32 4294967295, %s3830_s30   ;;  %s4000_s0 = int_to_ptr.vmem [resolvable:$true] %s569_s0 }
  0x20   : > { %4766 = sst [smem:[#allocation45_spill]] %s3995_s23  ;;  %p2684_p0 = scmp.ge.s32.totalorder %s3830_s30, 1 }
  0x21   : > { %p4738_p1 = scmp.eq.s32.totalorder %s3995_s23, 0  ;;  %p545_p2 = scmp.lt.s32.totalorder %s3830_s30, 3 }
  0x22   : > { %s3833_s5 = smov [#allocation8]   ;;  %s3834_s6 = smov [#allocation11]  }
  0x23   : > { %p4002_p3 = pnand %p2684_p0, %p545_p2  ;;  %s580_s24 = sshll.u32 %s3833_s5, 4  ;;  %s4009_s24 = int_to_ptr.vmem [resolvable:$true] %s580_s24 }
  0x24   : > { %s602_s25 = sshll.u32 %s3834_s6, 4  ;;  %s3835_s2 = smov [#allocation14]   ;;  %s4017_s25 = int_to_ptr.vmem [resolvable:$true] %s602_s25 }
  0x25   : > { %s4767_s1 = scalar_select %p4002_p3, 1, 0 }
  0x26   : > { %p3041_p5 = pneg %p4002_p3  ;;  %s4019_s27 = sshll.u32 %s3835_s2, 4  ;;  %s627_s27 = int_to_ptr.vmem [resolvable:$true] %s4019_s27 }
  0x27   : > { %4768 = sst [smem:[#allocation46_spill]] %s4767_s1  ;;  %s4770_s21 = sld [smem:[#allocation49_spill]] }
  0x28   : > { %p4013_p6 = pnand %p3041_p5, %p4738_p1 }
  0x2a   : > { %p4029_p8 = pneg %p4013_p6 }
  0x2d   : > { %s3218_s19 = scalar_lea.hbm %s4770_s21, 16 }
  0x2e   : > { %p3219_p7 = scmp.ne.s32.totalorder %s4770_s21, %s3218_s19  ;;  %p3225_p11 = scmp.lt.u32.totalorder %s3218_s19, %s4770_s21 }
  0x30   : > { %p3221_p9 = pnand %p4029_p8, %p3219_p7 }
  0x32   : > { %p3222_p10 = pneg %p3221_p9 }
  0x34   : > { %p3227_p12 = pnand %p3225_p11, %p3222_p10 }
  0x36   : > { %3230 = shalt.err (!%p3227_p12)
}
  0x37   : > { %s3231_s18 = scalar_lea.vmem %s4000_s0, 16  ;;  %s3238_s22 = scalar_lea.vmem %s4000_s0, 32 }
  0x38   : > { %p3232_p13 = scmp.ne.s32.totalorder %s4000_s0, %s3231_s18  ;;  %p3239_p5 = scmp.lt.s32.totalorder %s4000_s0, %s4000_s0 }
  0x39   : > { %p3240_p7 = scmp.lt.s32.totalorder %s3238_s22, %s3231_s18 }
  0x3a   : > { %p3234_p0 = pnand %p3232_p13, %p4029_p8 }
  0x3b   : > { %p3241_p9 = por %p3240_p7, %p3239_p5 }
  0x3c   : > { %p3235_p2 = pneg %p3234_p0 }
  0x3e   : > { %p3242_p4 = pnand %p3241_p9, %p3235_p2 }
  0x40   : > { %3245 = shalt.err (!%p3242_p4)
}
  0x41   : > { %3047 = dma.hbm_to_vmem [thread:$0]  (!%p4013_p6), %s4770_s21, 16, %s4000_s0, [#allocation6]  }
  0x42   : > { %s4772_s2 = sld [smem:[#allocation50_spill]] }
  0x48   : > { %s3246_s1 = scalar_lea.hbm %s4772_s2, 16 }
  0x49   : > { %p3247_p10 = scmp.ne.s32.totalorder %s4772_s2, %s3246_s1  ;;  %p3253_p4 = scmp.lt.u32.totalorder %s3246_s1, %s4772_s2 }
  0x4b   : > { %p3249_p11 = pnand %p3247_p10, %p4029_p8 }
  0x4d   : > { %p3250_p12 = pneg %p3249_p11 }
  0x4f   : > { %p3255_p13 = pnand %p3253_p4, %p3250_p12 }
  0x51   : > { %3258 = shalt.err (!%p3255_p13)
}
  0x52   : > { %s3259_s0 = scalar_lea.vmem %s4009_s24, 16  ;;  %s3266_s3 = scalar_lea.vmem %s4009_s24, 32 }
  0x53   : > { %p3260_p0 = scmp.ne.s32.totalorder %s4009_s24, %s3259_s0  ;;  %p3267_p7 = scmp.lt.s32.totalorder %s4009_s24, %s4009_s24 }
  0x54   : > { %p3268_p9 = scmp.lt.s32.totalorder %s3266_s3, %s3259_s0 }
  0x55   : > { %p3262_p2 = pnand %p3260_p0, %p4029_p8 }
  0x56   : > { %p3269_p10 = por %p3268_p9, %p3267_p7 }
  0x57   : > { %p3263_p5 = pneg %p3262_p2 }
  0x59   : > { %p3270_p11 = pnand %p3269_p10, %p3263_p5 }
  0x5b   : > { %3273 = shalt.err (!%p3270_p11)
}
  0x5c   : > { %3050 = dma.hbm_to_vmem [thread:$0]  (!%p4013_p6), %s4772_s2, 16, %s4009_s24, [#allocation9]  }
  0x5d   : > { %s4773_s4 = sld [smem:[#allocation52_spill]] }
  0x63   : > { %s3274_s5 = scalar_lea.hbm %s4773_s4, 16 }
  0x64   : > { %p3275_p12 = scmp.ne.s32.totalorder %s4773_s4, %s3274_s5  ;;  %p3281_p0 = scmp.lt.u32.totalorder %s3274_s5, %s4773_s4 }
  0x66   : > { %p3277_p4 = pnand %p3275_p12, %p4029_p8 }
  0x68   : > { %p3278_p13 = pneg %p3277_p4 }
  0x6a   : > { %p3283_p2 = pnand %p3281_p0, %p3278_p13 }
  0x6c   : > { %3286 = shalt.err (!%p3283_p2)
}
  0x6d   : > { %s3287_s24 = scalar_lea.vmem %s4017_s25, 16  ;;  %s3294_s23 = scalar_lea.vmem %s4017_s25, 32 }
  0x6e   : > { %p3288_p5 = scmp.ne.s32.totalorder %s4017_s25, %s3287_s24  ;;  %p3295_p10 = scmp.lt.s32.totalorder %s4017_s25, %s4017_s25 }
  0x6f   : > { %p3296_p11 = scmp.lt.s32.totalorder %s3294_s23, %s3287_s24 }
  0x70   : > { %p3290_p7 = pnand %p3288_p5, %p4029_p8 }
  0x71   : > { %p3297_p12 = por %p3296_p11, %p3295_p10 }
  0x72   : > { %p3291_p9 = pneg %p3290_p7 }
  0x74   : > { %p3298_p4 = pnand %p3297_p12, %p3291_p9 }
  0x76   : > { %3301 = shalt.err (!%p3298_p4)
}
  0x77   : > { %3056 = dma.hbm_to_vmem [thread:$0]  (!%p4013_p6), %s4773_s4, 16, %s4017_s25, [#allocation12]  }
  0x78   : > { %s3836_s19 = smov [#allocation17]   ;;  %s4774_s7 = sld [smem:[#allocation54_spill]] }
  0x79   : > { %s650_s5 = sshll.u32 %s3836_s19, 4  ;;  %s651_s5 = int_to_ptr.vmem [resolvable:$true] %s650_s5 }
  0x7e   : > { %s3302_s0 = scalar_lea.hbm %s4774_s7, 16 }
  0x7f   : > { %p3303_p13 = scmp.ne.s32.totalorder %s4774_s7, %s3302_s0  ;;  %p3309_p5 = scmp.lt.u32.totalorder %s3302_s0, %s4774_s7 }
  0x81   : > { %p3305_p0 = pnand %p3303_p13, %p4029_p8 }
  0x83   : > { %p3306_p2 = pneg %p3305_p0 }
  0x85   : > { %p3311_p7 = pnand %p3309_p5, %p3306_p2 }
  0x87   : > { %3314 = shalt.err (!%p3311_p7)
}
  0x88   : > { %s3315_s25 = scalar_lea.vmem %s627_s27, 16  ;;  %s3322_s1 = scalar_lea.vmem %s627_s27, 32 }
  0x89   : > { %p3316_p9 = scmp.ne.s32.totalorder %s627_s27, %s3315_s25  ;;  %p3323_p12 = scmp.lt.s32.totalorder %s627_s27, %s627_s27 }
  0x8a   : > { %p3324_p4 = scmp.lt.s32.totalorder %s3322_s1, %s3315_s25 }
  0x8b   : > { %p3318_p10 = pnand %p3316_p9, %p4029_p8 }
  0x8c   : > { %p3325_p1 = por %p3324_p4, %p3323_p12 }
  0x8d   : > { %p3319_p11 = pneg %p3318_p10 }
  0x8f   : > { %p3326_p3 = pnand %p3325_p1, %p3319_p11 }
  0x91   : > { %3329 = shalt.err (!%p3326_p3)
}
  0x92   : > { %3062 = dma.hbm_to_vmem [thread:$0]  (!%p4013_p6), %s4774_s7, 16, %s627_s27, [#allocation15]  }
  0x93   : > { %s4775_s9 = sld [smem:[#allocation55_spill]] }
  0x99   : > { %s3330_s22 = scalar_lea.hbm %s4775_s9, 16 }
  0x9a   : > { %p3331_p13 = scmp.ne.s32.totalorder %s4775_s9, %s3330_s22  ;;  %p3337_p3 = scmp.lt.u32.totalorder %s3330_s22, %s4775_s9 }
  0x9c   : > { %p3333_p0 = pnand %p3331_p13, %p4029_p8 }
  0x9e   : > { %p3334_p1 = pneg %p3333_p0 }
  0xa0   : > { %p3339_p2 = pnand %p3337_p3, %p3334_p1 }
  0xa2   : > { %3342 = shalt.err (!%p3339_p2)
}
  0xa3   : > { %s3343_s25 = scalar_lea.vmem %s651_s5, 16  ;;  %s3350_s27 = scalar_lea.vmem %s651_s5, 32 }
  0xa4   : > { %p3344_p5 = scmp.ne.s32.totalorder %s651_s5, %s3343_s25  ;;  %p3351_p10 = scmp.lt.s32.totalorder %s651_s5, %s651_s5 }
  0xa5   : > { %p3352_p11 = scmp.lt.s32.totalorder %s3350_s27, %s3343_s25 }
  0xa6   : > { %p3346_p7 = pnand %p3344_p5, %p4029_p8 }
  0xa7   : > { %p3353_p12 = por %p3352_p11, %p3351_p10 }
  0xa8   : > { %p3347_p9 = pneg %p3346_p7 }
  0xaa   : > { %p3354_p4 = pnand %p3353_p12, %p3347_p9 }
  0xac   : > { %3357 = shalt.err (!%p3354_p4)
}
  0xad   : > { %3068 = dma.hbm_to_vmem [thread:$0]  (!%p4013_p6), %s4775_s9, 16, %s651_s5, [#allocation18]  }
  0xae   : > { %s3837_s19 = smov [#allocation20]   ;;  %s3838_s18 = smov [#allocation23]  }
  0xaf   : > { %s674_s2 = sshll.u32 %s3837_s19, 4  ;;  %s699_s22 = sshll.u32 %s3838_s18, 4  ;;  %s675_s2 = int_to_ptr.vmem [resolvable:$true] %s674_s2  ;;  %s700_s22 = int_to_ptr.vmem [resolvable:$true] %s699_s22 }
  0xb0   : > { %s4776_s12 = sld [smem:[#allocation57_spill]] }
  0xb6   : > { %s3358_s24 = scalar_lea.hbm %s4776_s12, 512 }
  0xb7   : > { %p3359_p13 = scmp.ne.s32.totalorder %s4776_s12, %s3358_s24  ;;  %p3365_p3 = scmp.lt.u32.totalorder %s3358_s24, %s4776_s12 }
  0xb9   : > { %p3361_p0 = pnand %p3359_p13, %p4029_p8 }
  0xbb   : > { %p3362_p1 = pneg %p3361_p0 }
  0xbd   : > { %p3367_p2 = pnand %p3365_p3, %p3362_p1 }
  0xbf   : > { %3370 = shalt.err (!%p3367_p2)
}
  0xc0   : > { %s3371_s5 = scalar_lea.vmem %s675_s2, 512  ;;  %p3379_p10 = scmp.lt.s32.totalorder %s675_s2, %s675_s2 }
  0xc1   : > { %p3372_p5 = scmp.ne.s32.totalorder %s675_s2, %s3371_s5  ;;  %p3380_p11 = scmp.lt.s32.totalorder %s3371_s5, %s3371_s5 }
  0xc3   : > { %p3374_p7 = pnand %p3372_p5, %p4029_p8  ;;  %p3381_p12 = por %p3380_p11, %p3379_p10 }
  0xc5   : > { %p3375_p9 = pneg %p3374_p7 }
  0xc7   : > { %p3382_p4 = pnand %p3381_p12, %p3375_p9 }
  0xc9   : > { %3385 = shalt.err (!%p3382_p4)
}
  0xca   : > { %s4740_s10 = smov 128   ;;  %s4742_s19 = smov 8  }
  0xcb   : > { %3074 = dma.hbm_to_vmem [thread:$0]  (!%p4013_p6), %s4776_s12, 512, %s675_s2, [#allocation21], %s4740_s10, %s4740_s10, %s4742_s19  }
  0xcc   : > { %s3386_s23 = scalar_lea.hbm %s4714_s14, 16 }
  0xcd   : > { %p3387_p13 = scmp.ne.s32.totalorder %s4714_s14, %s3386_s23  ;;  %p3393_p3 = scmp.lt.u32.totalorder %s3386_s23, %s4714_s14 }
  0xcf   : > { %p3389_p0 = pnand %p3387_p13, %p4029_p8 }
  0xd1   : > { %p3390_p1 = pneg %p3389_p0 }
  0xd3   : > { %p3395_p2 = pnand %p3393_p3, %p3390_p1 }
  0xd5   : > { %3398 = shalt.err (!%p3395_p2)
}
  0xd6   : > { %s3399_s18 = scalar_lea.vmem %s700_s22, 16  ;;  %s3406_s2 = scalar_lea.vmem %s700_s22, 32 }
  0xd7   : > { %p3400_p5 = scmp.ne.s32.totalorder %s700_s22, %s3399_s18  ;;  %p3407_p10 = scmp.lt.s32.totalorder %s700_s22, %s700_s22 }
  0xd8   : > { %p3408_p11 = scmp.lt.s32.totalorder %s3406_s2, %s3399_s18 }
  0xd9   : > { %p3402_p7 = pnand %p3400_p5, %p4029_p8 }
  0xda   : > { %p3409_p12 = por %p3408_p11, %p3407_p10 }
  0xdb   : > { %p3403_p9 = pneg %p3402_p7 }
  0xdd   : > { %p3410_p4 = pnand %p3409_p12, %p3403_p9 }
  0xdf   : > { %3413 = shalt.err (!%p3410_p4)
}
  0xe0   : > { %3080 = dma.hbm_to_vmem [thread:$0]  (!%p4013_p6), %s4714_s14, 16, %s700_s22, [#allocation24]  }
  0xe1   : > { %s3841_s24 = smov [#allocation26]   ;;  %s3842_s25 = smov [#allocation2]  }
  0xe2   : > { %s720_s23 = sshll.u32 %s3841_s24, 4  ;;  %s558_s27 = sshll.u32 %s3842_s25, 4  ;;  %s721_s23 = int_to_ptr.vmem [resolvable:$true] %s720_s23  ;;  %s559_s27 = int_to_ptr.vmem [resolvable:$true] %s558_s27 }
  0xe3   : > { %s3414_s10 = scalar_lea.hbm %s4716_s16, 512 }
  0xe4   : > { %p3415_p13 = scmp.ne.s32.totalorder %s4716_s16, %s3414_s10  ;;  %p3421_p3 = scmp.lt.u32.totalorder %s3414_s10, %s4716_s16 }
  0xe6   : > { %p3417_p0 = pnand %p3415_p13, %p4029_p8 }
  0xe8   : > { %p3418_p1 = pneg %p3417_p0 }
  0xea   : > { %p3423_p2 = pnand %p3421_p3, %p3418_p1 }
  0xec   : > { %3426 = shalt.err (!%p3423_p2)
}
  0xed   : > { %s3427_s22 = scalar_lea.vmem %s721_s23, 512  ;;  %p3435_p10 = scmp.lt.s32.totalorder %s721_s23, %s721_s23 }
  0xee   : > { %p3428_p5 = scmp.ne.s32.totalorder %s721_s23, %s3427_s22  ;;  %p3436_p11 = scmp.lt.s32.totalorder %s3427_s22, %s3427_s22 }
  0xf0   : > { %p3430_p7 = pnand %p3428_p5, %p4029_p8  ;;  %p3437_p12 = por %p3436_p11, %p3435_p10 }
  0xf2   : > { %p3431_p9 = pneg %p3430_p7 }
  0xf4   : > { %p3438_p4 = pnand %p3437_p12, %p3431_p9 }
  0xf6   : > { %3441 = shalt.err (!%p3438_p4)
}
  0xf7   : > { %s4777_s3 = smov 8   ;;  %s4778_s24 = smov 128  }
  0xf8   : > { %3086 = dma.hbm_to_vmem [thread:$0]  (!%p4013_p6), %s4716_s16, 512, %s721_s23, [#allocation27], %s4778_s24, %s4778_s24, %s4777_s3  }
  0xf9   : > { %s4779_s5 = sld [smem:[#allocation47_spill]] }
  0xff   : > { %s3442_s18 = scalar_lea.hbm %s4779_s5, 16 }
 0x100   : > { %p3443_p13 = scmp.ne.s32.totalorder %s4779_s5, %s3442_s18  ;;  %p3449_p3 = scmp.lt.u32.totalorder %s3442_s18, %s4779_s5 }
 0x102   : > { %p3445_p0 = pnand %p3443_p13, %p4029_p8 }
 0x104   : > { %p3446_p1 = pneg %p3445_p0 }
 0x106   : > { %p3451_p2 = pnand %p3449_p3, %p3446_p1 }
 0x108   : > { %3454 = shalt.err (!%p3451_p2)
}
 0x109   : > { %s3455_s19 = scalar_lea.vmem %s559_s27, 16  ;;  %s3462_s23 = scalar_lea.vmem %s559_s27, 32 }
 0x10a   : > { %p3456_p5 = scmp.ne.s32.totalorder %s559_s27, %s3455_s19  ;;  %p3463_p10 = scmp.lt.s32.totalorder %s559_s27, %s559_s27 }
 0x10b   : > { %p3464_p11 = scmp.lt.s32.totalorder %s3462_s23, %s3455_s19 }
 0x10c   : > { %p3458_p7 = pnand %p3456_p5, %p4029_p8 }
 0x10d   : > { %p3465_p12 = por %p3464_p11, %p3463_p10 }
 0x10e   : > { %p3459_p9 = pneg %p3458_p7 }
 0x110   : > { %p3466_p4 = pnand %p3465_p12, %p3459_p9 }
 0x112   : > { %3469 = shalt.err (!%p3466_p4)
}
 0x113   : > { %3044 = dma.hbm_to_vmem [thread:$0]  (!%p4013_p6), %s4779_s5, 16, %s559_s27, [#allocation3]  }
 0x114   : > { %s3843_s4 = smov [#allocation10]   ;;  %s3844_s18 = smov [#allocation13]  }
 0x115   : > { %s591_s1 = sshll.u32 %s3843_s4, 4  ;;  %s612_s2 = sshll.u32 %s3844_s18, 4  ;;  %s592_s1 = int_to_ptr.vmem [resolvable:$true] %s591_s1  ;;  %s613_s2 = int_to_ptr.vmem [resolvable:$true] %s612_s2 }
 0x116   : > { %s4780_s7 = sld [smem:[#allocation51_spill]] }
 0x11c   : > { %s3470_s9 = scalar_lea.hbm %s4780_s7, 16 }
 0x11d   : > { %p3471_p13 = scmp.ne.s32.totalorder %s4780_s7, %s3470_s9  ;;  %p3477_p3 = scmp.lt.u32.totalorder %s3470_s9, %s4780_s7 }
 0x11f   : > { %p3473_p0 = pnand %p3471_p13, %p4029_p8 }
 0x121   : > { %p3474_p1 = pneg %p3473_p0 }
 0x123   : > { %p3479_p2 = pnand %p3477_p3, %p3474_p1 }
 0x125   : > { %3482 = shalt.err (!%p3479_p2)
}
 0x126   : > { %s3483_s27 = scalar_lea.vmem %s592_s1, 16  ;;  %s3490_s25 = scalar_lea.vmem %s592_s1, 32 }
 0x127   : > { %p3484_p5 = scmp.ne.s32.totalorder %s592_s1, %s3483_s27  ;;  %p3491_p10 = scmp.lt.s32.totalorder %s592_s1, %s592_s1 }
 0x128   : > { %p3492_p11 = scmp.lt.s32.totalorder %s3490_s25, %s3483_s27 }
 0x129   : > { %p3486_p7 = pnand %p3484_p5, %p4029_p8 }
 0x12a   : > { %p3493_p12 = por %p3492_p11, %p3491_p10 }
 0x12b   : > { %p3487_p9 = pneg %p3486_p7 }
 0x12d   : > { %p3494_p4 = pnand %p3493_p12, %p3487_p9 }
 0x12f   : > { %3497 = shalt.err (!%p3494_p4)
}
 0x130   : > { %3053 = dma.hbm_to_vmem [thread:$0]  (!%p4013_p6), %s4780_s7, 16, %s592_s1, [#allocation9]  }
 0x131   : > { %s4781_s0 = sld [smem:[#allocation53_spill]] }
 0x137   : > { %s3498_s22 = scalar_lea.hbm %s4781_s0, 512 }
 0x138   : > { %p3499_p13 = scmp.ne.s32.totalorder %s4781_s0, %s3498_s22  ;;  %p3505_p3 = scmp.lt.u32.totalorder %s3498_s22, %s4781_s0 }
 0x13a   : > { %p3501_p0 = pnand %p3499_p13, %p4029_p8 }
 0x13c   : > { %p3502_p1 = pneg %p3501_p0 }
 0x13e   : > { %p3507_p2 = pnand %p3505_p3, %p3502_p1 }
 0x140   : > { %3510 = shalt.err (!%p3507_p2)
}
 0x141   : > { %s3511_s25 = scalar_lea.vmem %s613_s2, 512  ;;  %p3519_p10 = scmp.lt.s32.totalorder %s613_s2, %s613_s2 }
 0x142   : > { %p3512_p5 = scmp.ne.s32.totalorder %s613_s2, %s3511_s25  ;;  %p3520_p11 = scmp.lt.s32.totalorder %s3511_s25, %s3511_s25 }
 0x144   : > { %p3514_p7 = pnand %p3512_p5, %p4029_p8  ;;  %p3521_p12 = por %p3520_p11, %p3519_p10 }
 0x146   : > { %p3515_p9 = pneg %p3514_p7 }
 0x148   : > { %p3522_p4 = pnand %p3521_p12, %p3515_p9 }
 0x14a   : > { %3525 = shalt.err (!%p3522_p4)
}
 0x14b   : > { %3059 = dma.hbm_to_vmem [thread:$0]  (!%p4013_p6), %s4781_s0, 512, %s613_s2, [#allocation12], %s4778_s24, %s4778_s24, %s4777_s3  }
 0x14c   : > { %s3845_s18 = smov [#allocation16]   ;;  %s3846_s12 = smov [#allocation19]  }
 0x14d   : > { %s636_s9 = sshll.u32 %s3845_s18, 4  ;;  %s664_s22 = sshll.u32 %s3846_s12, 4  ;;  %s637_s9 = int_to_ptr.vmem [resolvable:$true] %s636_s9  ;;  %s665_s22 = int_to_ptr.vmem [resolvable:$true] %s664_s22 }
 0x14e   : > { %s3526_s10 = scalar_lea.hbm %s4708_s8, 512 }
 0x14f   : > { %p3527_p13 = scmp.ne.s32.totalorder %s4708_s8, %s3526_s10  ;;  %p3533_p3 = scmp.lt.u32.totalorder %s3526_s10, %s4708_s8 }
 0x151   : > { %p3529_p0 = pnand %p3527_p13, %p4029_p8 }
 0x153   : > { %p3530_p1 = pneg %p3529_p0 }
 0x155   : > { %p3535_p2 = pnand %p3533_p3, %p3530_p1 }
 0x157   : > { %3538 = shalt.err (!%p3535_p2)
}
 0x158   : > { %s3539_s2 = scalar_lea.vmem %s637_s9, 512  ;;  %p3547_p10 = scmp.lt.s32.totalorder %s637_s9, %s637_s9 }
 0x159   : > { %p3540_p5 = scmp.ne.s32.totalorder %s637_s9, %s3539_s2  ;;  %p3548_p11 = scmp.lt.s32.totalorder %s3539_s2, %s3539_s2 }
 0x15b   : > { %p3542_p7 = pnand %p3540_p5, %p4029_p8  ;;  %p3549_p12 = por %p3548_p11, %p3547_p10 }
 0x15d   : > { %p3543_p9 = pneg %p3542_p7 }
 0x15f   : > { %p3550_p4 = pnand %p3549_p12, %p3543_p9 }
 0x161   : > { %3553 = shalt.err (!%p3550_p4)
}
 0x162   : > { %3065 = dma.hbm_to_vmem [thread:$0]  (!%p4013_p6), %s4708_s8, 512, %s637_s9, [#allocation15], %s4778_s24, %s4778_s24, %s4777_s3  }
 0x163   : > { %s3554_s19 = scalar_lea.hbm %s4711_s11, 16 }
 0x164   : > { %p3555_p13 = scmp.ne.s32.totalorder %s4711_s11, %s3554_s19  ;;  %p3561_p3 = scmp.lt.u32.totalorder %s3554_s19, %s4711_s11 }
 0x166   : > { %p3557_p0 = pnand %p3555_p13, %p4029_p8 }
 0x168   : > { %p3558_p1 = pneg %p3557_p0 }
 0x16a   : > { %p3563_p2 = pnand %p3561_p3, %p3558_p1 }
 0x16c   : > { %3566 = shalt.err (!%p3563_p2)
}
 0x16d   : > { %s3567_s1 = scalar_lea.vmem %s665_s22, 16  ;;  %s3574_s9 = scalar_lea.vmem %s665_s22, 32 }
 0x16e   : > { %p3568_p5 = scmp.ne.s32.totalorder %s665_s22, %s3567_s1  ;;  %p3575_p10 = scmp.lt.s32.totalorder %s665_s22, %s665_s22 }
 0x16f   : > { %p3576_p11 = scmp.lt.s32.totalorder %s3574_s9, %s3567_s1 }
 0x170   : > { %p3570_p7 = pnand %p3568_p5, %p4029_p8 }
 0x171   : > { %p3577_p12 = por %p3576_p11, %p3575_p10 }
 0x172   : > { %p3571_p9 = pneg %p3570_p7 }
 0x174   : > { %p3578_p4 = pnand %p3577_p12, %p3571_p9 }
 0x176   : > { %3581 = shalt.err (!%p3578_p4)
}
 0x177   : > { %3071 = dma.hbm_to_vmem [thread:$0]  (!%p4013_p6), %s4711_s11, 16, %s665_s22, [#allocation18]  }
 0x178   : > { %s3847_s4 = smov [#allocation22]   ;;  %s3848_s12 = smov [#allocation25]  }
 0x179   : > { %s688_s18 = sshll.u32 %s3847_s4, 4  ;;  %s710_s19 = sshll.u32 %s3848_s12, 4  ;;  %s689_s18 = int_to_ptr.vmem [resolvable:$true] %s688_s18  ;;  %s711_s19 = int_to_ptr.vmem [resolvable:$true] %s710_s19 }
 0x17a   : > { %s3582_s27 = scalar_lea.hbm %s4713_s13, 16 }
 0x17b   : > { %p3583_p13 = scmp.ne.s32.totalorder %s4713_s13, %s3582_s27  ;;  %p3589_p3 = scmp.lt.u32.totalorder %s3582_s27, %s4713_s13 }
 0x17d   : > { %p3585_p0 = pnand %p3583_p13, %p4029_p8 }
 0x17f   : > { %p3586_p1 = pneg %p3585_p0 }
 0x181   : > { %p3591_p2 = pnand %p3589_p3, %p3586_p1 }
 0x183   : > { %3594 = shalt.err (!%p3591_p2)
}
 0x184   : > { %s3595_s22 = scalar_lea.vmem %s689_s18, 16  ;;  %s3602_s5 = scalar_lea.vmem %s689_s18, 32 }
 0x185   : > { %p3596_p5 = scmp.ne.s32.totalorder %s689_s18, %s3595_s22  ;;  %p3603_p10 = scmp.lt.s32.totalorder %s689_s18, %s689_s18 }
 0x186   : > { %p3604_p11 = scmp.lt.s32.totalorder %s3602_s5, %s3595_s22 }
 0x187   : > { %p3598_p7 = pnand %p3596_p5, %p4029_p8 }
 0x188   : > { %p3605_p12 = por %p3604_p11, %p3603_p10 }
 0x189   : > { %p3599_p9 = pneg %p3598_p7 }
 0x18b   : > { %p3606_p4 = pnand %p3605_p12, %p3599_p9 }
 0x18d   : > { %3609 = shalt.err (!%p3606_p4)
}
 0x18e   : > { %3077 = dma.hbm_to_vmem [thread:$0]  (!%p4013_p6), %s4713_s13, 16, %s689_s18, [#allocation21]  }
 0x18f   : > { %s3610_s27 = scalar_lea.hbm %s4715_s15, 16 }
 0x190   : > { %p3611_p13 = scmp.ne.s32.totalorder %s4715_s15, %s3610_s27  ;;  %p3617_p3 = scmp.lt.u32.totalorder %s3610_s27, %s4715_s15 }
 0x192   : > { %p3613_p0 = pnand %p3611_p13, %p4029_p8 }
 0x194   : > { %p3614_p1 = pneg %p3613_p0 }
 0x196   : > { %p3619_p2 = pnand %p3617_p3, %p3614_p1 }
 0x198   : > { %3622 = shalt.err (!%p3619_p2)
}
 0x199   : > { %s3623_s22 = scalar_lea.vmem %s711_s19, 16  ;;  %s3630_s18 = scalar_lea.vmem %s711_s19, 32 }
 0x19a   : > { %p3624_p5 = scmp.ne.s32.totalorder %s711_s19, %s3623_s22  ;;  %p3631_p10 = scmp.lt.s32.totalorder %s711_s19, %s711_s19 }
 0x19b   : > { %p3632_p11 = scmp.lt.s32.totalorder %s3630_s18, %s3623_s22 }
 0x19c   : > { %p3626_p7 = pnand %p3624_p5, %p4029_p8 }
 0x19d   : > { %p3633_p12 = por %p3632_p11, %p3631_p10 }
 0x19e   : > { %p3627_p9 = pneg %p3626_p7 }
 0x1a0   : > { %p3634_p4 = pnand %p3633_p12, %p3627_p9 }
 0x1a2   : > { %3637 = shalt.err (!%p3634_p4)
}
 0x1a3   : > { %3083 = dma.hbm_to_vmem [thread:$0]  (!%p4013_p6), %s4715_s15, 16, %s711_s19, [#allocation24]  }
 0x1a4   : > { %s3849_s12 = smov [#allocation28]   ;;  %s3850_s10 = smov [#allocation29]  }
 0x1a5   : > { %s734_s23 = sshll.u32 %s3849_s12, 4  ;;  %s750_s27 = sshll.u32 %s3850_s10, 4  ;;  %s735_s23 = int_to_ptr.vmem [resolvable:$true] %s734_s23  ;;  %s751_s27 = int_to_ptr.vmem [resolvable:$true] %s750_s27 }
 0x1a6   : > { %s3638_s9 = scalar_lea.hbm %s4717_s17, 16 }
 0x1a7   : > { %p3639_p13 = scmp.ne.s32.totalorder %s4717_s17, %s3638_s9  ;;  %p3645_p3 = scmp.lt.u32.totalorder %s3638_s9, %s4717_s17 }
 0x1a9   : > { %p3641_p0 = pnand %p3639_p13, %p4029_p8 }
 0x1ab   : > { %p3642_p1 = pneg %p3641_p0 }
 0x1ad   : > { %p3647_p2 = pnand %p3645_p3, %p3642_p1 }
 0x1af   : > { %3650 = shalt.err (!%p3647_p2)
}
 0x1b0   : > { %s3651_s19 = scalar_lea.vmem %s735_s23, 16  ;;  %s3658_s4 = scalar_lea.vmem %s735_s23, 32 }
 0x1b1   : > { %p3652_p5 = scmp.ne.s32.totalorder %s735_s23, %s3651_s19  ;;  %p3659_p10 = scmp.lt.s32.totalorder %s735_s23, %s735_s23 }
 0x1b2   : > { %p3660_p11 = scmp.lt.s32.totalorder %s3658_s4, %s3651_s19 }
 0x1b3   : > { %p3654_p7 = pnand %p3652_p5, %p4029_p8 }
 0x1b4   : > { %p3661_p12 = por %p3660_p11, %p3659_p10 }
 0x1b5   : > { %p3655_p9 = pneg %p3654_p7 }
 0x1b7   : > { %p3662_p4 = pnand %p3661_p12, %p3655_p9 }
 0x1b9   : > { %3665 = shalt.err (!%p3662_p4)
}
 0x1ba   : > { %3089 = dma.hbm_to_vmem [thread:$0]  (!%p4013_p6), %s4717_s17, 16, %s735_s23, [#allocation27]  }
 0x1bb   : > { %s3666_s9 = scalar_lea.hbm %s4720_s20, 512 }
 0x1bc   : > { %p3667_p13 = scmp.ne.s32.totalorder %s4720_s20, %s3666_s9  ;;  %p3673_p3 = scmp.lt.u32.totalorder %s3666_s9, %s4720_s20 }
 0x1be   : > { %p3669_p0 = pnand %p3667_p13, %p4029_p8 }
 0x1c0   : > { %p3670_p1 = pneg %p3669_p0 }
 0x1c2   : > { %p3675_p2 = pnand %p3673_p3, %p3670_p1 }
 0x1c4   : > { %3678 = shalt.err (!%p3675_p2)
}
 0x1c5   : > { %s3679_s19 = scalar_lea.vmem %s751_s27, 512  ;;  %p3687_p10 = scmp.lt.s32.totalorder %s751_s27, %s751_s27 }
 0x1c6   : > { %p3680_p5 = scmp.ne.s32.totalorder %s751_s27, %s3679_s19  ;;  %p3688_p11 = scmp.lt.s32.totalorder %s3679_s19, %s3679_s19 }
 0x1c8   : > { %p3682_p7 = pnand %p3680_p5, %p4029_p8  ;;  %p3689_p12 = por %p3688_p11, %p3687_p10 }
 0x1ca   : > { %p3683_p9 = pneg %p3682_p7 }
 0x1cc   : > { %p3690_p4 = pnand %p3689_p12, %p3683_p9 }
 0x1ce   : > { %3693 = shalt.err (!%p3690_p4)
}
 0x1cf   : > { %s4782_s6 = sld [smem:[#allocation44_spill]]  ;;  %s4783_s12 = sld [smem:[#allocation45_spill]] }
 0x1d0   : > { %3092 = dma.hbm_to_vmem [thread:$0]  (!%p4013_p6), %s4720_s20, 512, %s751_s27, [#allocation30], %s4778_s24, %s4778_s24, %s4777_s3  }
 0x1d1   : > { %s2683_s26 = sadd.s32 4294967294, %s3830_s30   ;;  %s4369_s10 = sadd.s32 1, %s3830_s30  }
 0x1d2   : > { %s75_s25 = sadd.s32 1, %s3826_s29  ;;  %s72_s1 = ssub.s32 %s3830_s30, %s4369_s10 }
 0x1d3   : > { %p82_p8 = scmp.ne.s32.totalorder %s3826_s29, %s3822_s28  ;;  %p73_p13 = scmp.eq.s32.totalorder %s72_s1, 0 }
 0x1d4   : > { %p83_p0 = scmp.eq.s32.totalorder %s3830_s30, 0  ;;  %p538_p9 = scmp.eq.s32.totalorder %s2683_s26, 1 }
 0x1d5   : > { %p88_p1 = scmp.ne.s32.totalorder %s3822_s28, %s4782_s6  ;;  %p532_p3 = scmp.eq.s32.totalorder %s4783_s12, 1 }
 0x1d6   : > { %s4381_s9 = scalar_select %p73_p13, %s3826_s29, %s75_s25  }
 0x1d7   : > { %p84_p2 = por %p83_p0, %p82_p8  ;;  %p4784_p5 = scmp.eq.s32.totalorder %s4783_s12, 0 }
 0x1d8   : > { %p4389_p6 = por %p532_p3, %p82_p8  ;;  %p3118_p10 = scmp.lt.s32.totalorder %s3830_s30, 2 }
 0x1d9   : > { %p4385_p7 = por %p4784_p5, %p88_p1  ;;  %s767_s27 = sand.u32 1, %s3830_s30  }
 0x1da   : > { %s4786_s24 = scalar_select %p4389_p6, 1, 0 }
 0x1db   : > { %p4395_p11 = por %p538_p9, %p88_p1  ;;  %s769_s22 = sand.u32 1, %s3826_s29  }
 0x1dc   : > { %s2704_s18 = sshll.u32 %s3830_s30, 7  ;;  %s2703_s5 = sshll.u32 %s769_s22, 3 }
 0x1dd   : > { %s4787_s2 = scalar_select %p4395_p11, 1, 0 }
 0x1de   : > { %s4788_s4 = sld [smem:[#allocation48_spill]]  ;;  %p4406_p12 = pnand %p3118_p10, %p84_p2 }
 0x1df   : > { %s771_s26 = scalar_lea.vmem [#allocation5], %s2703_s5  ;;  %s768_s1 = scalar_lea.sflag [#allocation6], %s767_s27 }
 0x1e0   : > { %s778_s25 = sshll.u32 %s771_s26, 4  ;;  %p3696_p8 = pneg %p4406_p12  ;;  %s4410_s25 = int_to_ptr.vmem [resolvable:$true] %s778_s25 }
 0x1e4   : > { %s4404_s6 = scalar_lea.hbm %s4788_s4, %s2704_s18  ;;  %s3699_s23 = scalar_lea.hbm %s4788_s4, 256 }
 0x1e5   : > { %s3694_s22 = scalar_lea.hbm %s4404_s6, 128  ;;  %p3700_p1 = scmp.lt.u32.totalorder %s4404_s6, %s4788_s4 }
 0x1e6   : > { %p3695_p4 = scmp.ne.s32.totalorder %s4404_s6, %s3694_s22  ;;  %p3701_p3 = scmp.lt.u32.totalorder %s3699_s23, %s3694_s22 }
 0x1e7   : > { %p3703_p5 = scmp.lt.u32.totalorder %s3694_s22, %s4404_s6 }
 0x1e8   : > { %p3697_p13 = pnand %p3696_p8, %p3695_p4  ;;  %p3702_p2 = por %p3701_p3, %p3700_p1 }
 0x1ea   : > { %p3698_p0 = pneg %p3697_p13  ;;  %p3704_p9 = por %p3703_p5, %p3702_p2 }
 0x1ec   : > { %p3705_p10 = pnand %p3704_p9, %p3698_p0 }
 0x1ee   : > { %3708 = shalt.err (!%p3705_p10)
}
 0x1ef   : > { %s3709_s27 = scalar_lea.vmem %s4410_s25, 128  ;;  %s3851_s5 = smov [#allocation5]  }
 0x1f0   : > { %p3710_p4 = scmp.ne.s32.totalorder %s4410_s25, %s3709_s27  ;;  %s3714_s26 = sshll.u32 %s3851_s5, 4  ;;  %s3715_s26 = int_to_ptr.vmem [resolvable:$false] %s3714_s26 }
 0x1f1   : > { %s3716_s7 = scalar_lea.vmem %s3715_s26, 256  ;;  %p3717_p6 = scmp.lt.s32.totalorder %s4410_s25, %s3715_s26 }
 0x1f2   : > { %p3712_p13 = pnand %p3710_p4, %p3696_p8  ;;  %p3718_p1 = scmp.lt.s32.totalorder %s3716_s7, %s3709_s27 }
 0x1f4   : > { %p3713_p11 = pneg %p3712_p13  ;;  %p3719_p3 = por %p3718_p1, %p3717_p6 }
 0x1f6   : > { %p3720_p2 = pnand %p3719_p3, %p3713_p11 }
 0x1f8   : > { %3723 = shalt.err (!%p3720_p2)
}
 0x1f9   : > { %3096 = dma.hbm_to_vmem [thread:$0]  (!%p4406_p12), %s4404_s6, 128, %s4410_s25, %s768_s1  }
 0x1fa   : > { %s4790_s0 = sld [smem:[#allocation46_spill]] }
 0x200   : > { %p4791_p0 = scmp.ne.s32.totalorder %s4790_s0, 0 }
 0x201   : > { %s4792_s22 = sld [smem:[#allocation45_spill]] (!%p4791_p0) }
 0x202   : > { %787 = sbr.rel (%p4791_p0) target bundleno = 4848 (0x12f0), region = 108 }
 0x207   : > { %p4793_p8 = scmp.eq.s32.totalorder (!%p4791_p0), %s4792_s22, 0 }
 0x209   : > { %3769 = dma.done.wait (%p4793_p8), [#allocation3], 16   ;;  %p4794_p5 = pmov %p4793_p8 }
 0x20a   : > { %s793_s18 = sand.u32 1, %s4792_s22   ;;  %s4445_s19 = sand.u32 1, %s3822_s28  }
 0x20b   : > { %3771 = vsyncadd (%p4794_p5), [#allocation3], 4294967280  ;;  %s2707_s12 = sshll.u32 %s4445_s19, 3  ;;  %s794_s23 = scalar_lea.sflag [#allocation6], %s793_s18 }
 0x20c   : > { %s797_s27 = scalar_lea.vmem [#allocation5], %s2707_s12 }
 0x20d   : > { %3773 = dma.done.wait (%p4385_p7), %s794_s23, 128  }
 0x20e   : > { %3775 = vsyncadd (%p4385_p7), %s794_s23, 4294967168  ;;  %p4795_p6 = pmov %p4794_p5 }
 0x20f   : > { %p4796_p11 = pmov %p4794_p5 }
 0x210   : > { %3777 = dma.done.wait (%p4795_p6), [#allocation6], 16  }
 0x211   : > { %3779 = vsyncadd (%p4796_p11), [#allocation6], 4294967280  ;;  %p4797_p12 = pmov %p4794_p5 }
 0x212   : > { %p4798_p9 = pmov %p4794_p5 }
 0x213   : > { %3781 = dma.done.wait (%p4797_p12), [#allocation9], 32  }
 0x214   : > { %3783 = vsyncadd (%p4798_p9), [#allocation9], 4294967264  ;;  %p4799_p10 = pmov %p4794_p5 }
 0x215   : > { %p4800_p4 = pmov %p4794_p5 }
 0x216   : > { %3785 = dma.done.wait (%p4799_p10), [#allocation12], 528  }
 0x217   : > { %3787 = vsyncadd (%p4800_p4), [#allocation12], 4294966768  ;;  %p4801_p7 = pmov %p4800_p4 }
 0x218   : > { %p4802_p13 = pmov %p4800_p4 }
 0x219   : > { %3789 = dma.done.wait (%p4801_p7), [#allocation15], 528  }
 0x21a   : > { %3791 = vsyncadd (%p4802_p13), [#allocation15], 4294966768  ;;  %p4803_p1 = pmov %p4800_p4 }
 0x21c   : > { %3793 = dma.done.wait (%p4803_p1), [#allocation18], 32   ;;  %p4804_p3 = pmov %p4803_p1 }
 0x21d   : > { %p4805_p2 = pmov %p4803_p1 }
 0x21e   : > { %3795 = vsyncadd (%p4804_p3), [#allocation18], 4294967264 }
 0x21f   : > { %3797 = dma.done.wait (%p4805_p2), [#allocation21], 528   ;;  %p4806_p0 = pmov %p4803_p1 }
 0x221   : > { %3799 = vsyncadd (%p4806_p0), [#allocation21], 4294966768  ;;  %p4807_p8 = pmov %p4806_p0 }
 0x222   : > { %p4808_p5 = pmov %p4806_p0 }
 0x223   : > { %3801 = dma.done.wait (%p4807_p8), [#allocation24], 32  }
 0x224   : > { %3803 = vsyncadd (%p4808_p5), [#allocation24], 4294967264  ;;  %p4809_p6 = pmov %p4806_p0 }
 0x225   : > { %p4810_p11 = pmov %p4806_p0 }
 0x226   : > { %3805 = dma.done.wait (%p4809_p6), [#allocation27], 528  }
 0x227   : > { %3807 = vsyncadd (%p4810_p11), [#allocation27], 4294966768  ;;  %p4811_p12 = pmov %p4806_p0 }
 0x228   : > { %p4812_p9 = pmov %p4806_p0 }
 0x229   : > { %3809 = dma.done.wait (%p4811_p12), [#allocation30], 512  }
 0x22a   : > { %3811 = vsyncadd (%p4812_p9), [#allocation30], 4294966784  ;;  %vm944_vm0 = vcmask 261120   ;;  %v922_v0 = vld [vmem:[%s797_s27] sm:$0xff]  ;;  %v4488_v1 = vld [vmem:[#allocation2] sm:$0x1] }
 0x22b   : > { %vm925_vm1 = vcmask 253952   ;;  %v945_v2 = vsel %vm944_vm0, %v922_v0, 0.0  ;;  %v1050_v14 = vld [vmem:[#allocation16] sm:$0xff]  ;;  %v1051_v15 = vld [vmem:[#allocation16 + $0x8] sm:$0xff]  ;;  %v3852_v17 = vmov 0.0|0.0   ;;  %v1052_v20 = vld [vmem:[#allocation16 + $0x10] sm:$0xff] }
 0x22c   : > { %946 = vadd.xlane.f32.xlu0 %v945_v2  ;;  %v926_v3 = vsel %vm925_vm1, %v4488_v1, 0.0  ;;  %v972_v16 = vld [vmem:[#allocation13] sm:$0xff]  ;;  %2939 = vmatprep.subr.bf16.mxu1 %v3852_v17  ;;  %v2940_v18 = vpack.c.bf16 %v1051_v15, %v1050_v14  ;;  %v973_v19 = vld [vmem:[#allocation13 + $0x8] sm:$0xff]  ;;  %vm3853_vm2 = vmmov 0   ;;  %v3854_v23 = vmov 0.0   ;;  %v974_v24 = vld [vmem:[#allocation13 + $0x10] sm:$0xff] }
 0x22d   : > { %2933 = vmatprep.subr.bf16.mxu0 %v3852_v17  ;;  %v1053_v21 = vld [vmem:[#allocation16 + $0x18] sm:$0xff]  ;;  %v2934_v22 = vpack.c.bf16 %v973_v19, %v972_v16  ;;  %2826 = vmatprep.mubr.msk.f32.mxu1 %vm3853_vm2, %v3854_v23  ;;  %v923_v40 = vld [vmem:[#allocation7] sm:$0x1]  ;;  %s4813_s25 = sld [smem:[#allocation56_spill]]  ;;  %v2727_v52 = vld [vmem:[#allocation17] ss:$0 sm:$0xff] }
 0x22e   : > { %v975_v25 = vld [vmem:[#allocation13 + $0x18] sm:$0xff]  ;;  %2815 = vmatprep.mubr.msk.f32.mxu0 %vm3853_vm2, %v3854_v23  ;;  %2941 = vmatpush3.bf16.msra.mxu1 %v2940_v18  ;;  %v2943_v26 = vpack.c.bf16 %v1053_v21, %v1052_v20  ;;  %vm1215_vm3 = vcmask 64512   ;;  %v976_v56 = vld [vmem:[#allocation14] sm:$0x1]  ;;  %v2729_v60 = vld [vmem:[#allocation19] ss:$0 sm:$0xff] }
 0x22f   : > { %2935 = vmatpush3.bf16.msra.mxu0 %v2934_v22  ;;  %2942 = vmatprep.subr.bf16.mxu1 %v3852_v17  ;;  %v2937_v27 = vpack.c.bf16 %v975_v25, %v974_v24  ;;  %v2724_v35 = vld [vmem:[#allocation10] ss:$0 sm:$0xff]  ;;  %v2725_v37 = vld [vmem:[#allocation11] ss:$0 sm:$0xff]  ;;  %v924_v45 = vld [vmem:[#allocation8] sm:$0x1] }
 0x230   : > { %927 = vadd.xlane.f32.xlu0 %v926_v3  ;;  %2936 = vmatprep.subr.bf16.mxu0 %v3852_v17  ;;  %vm1293_vm4 = vcmask 57344   ;;  %s3855_s12 = smov 120   ;;  %s3856_s23 = smov 112  }
 0x231   : > { %s3857_s27 = smov 104   ;;  %s4814_s1 = sld [smem:[#allocation58_spill]] }
 0x232   : > { %2944 = vmatpush3.bf16.msra.mxu1 %v2943_v26  ;;  %s4815_s3 = sld [smem:[#allocation59_spill]]  ;;  %s4816_s26 = sld [smem:[#allocation60_spill]] }
 0x233   : > { %2938 = vmatpush3.bf16.msra.mxu0 %v2937_v27  ;;  %2840 = vmatprep.subr.mxu1 %v3854_v23  ;;  %v1134_v43 = vld [vmem:[%s4813_s25] sm:$0xff]  ;;  %v1135_v44 = vld [vmem:[%s4813_s25 + $0x8] sm:$0xff]  ;;  %v1136_v49 = vld [vmem:[%s4813_s25 + $0x10] sm:$0xff]  ;;  %s2750_s7 = sshll.u32 %s4792_s22, 4  ;;  %s920_s0 = scalar_lea.vmem [#allocation31], %s4445_s19 }
 0x234   : > { %2945 = vmatprep.subr.bf16.mxu0 %v3852_v17  ;;  %v2946_v47 = vpack.c.bf16 %v1135_v44, %v1134_v43  ;;  %v1137_v50 = vld [vmem:[%s4813_s25 + $0x18] sm:$0xff]  ;;  %s2453_s18 = sshll.u32 %s920_s0, 4  ;;  %p4818_p4 = scmp.ne.s32.totalorder %s4786_s24, 0  ;;  %s4658_s18 = int_to_ptr.vmem [resolvable:$true] %s2453_s18 }
 0x235   : > { %v2949_v51 = vpack.c.bf16 %v1137_v50, %v1136_v49  ;;  %s3724_s6 = scalar_lea.vmem %s4658_s18, 16  ;;  %s3858_s22 = smov [#allocation31]  }
 0x236   : > { %p3725_p10 = scmp.ne.s32.totalorder %s4658_s18, %s3724_s6  ;;  %s3728_s5 = sshll.u32 %s3858_s22, 4  ;;  %s3729_s5 = int_to_ptr.vmem [resolvable:$false] %s3728_s5 }
 0x237   : > { %p3731_p1 = scmp.lt.s32.totalorder %s4658_s18, %s3729_s5 }
 0x238   : > { %p3726_p7 = pnand %p3725_p10, %p4818_p4 }
 0x23a   : > { %p3727_p13 = pneg %p3726_p7 }
 0x2b9   : > { %v947_v4 = vpop.xlane.xlu0 %946 }
 0x2ba   : > { %v948_v5 = vmul.f32 0.03125, %v947_v4 }
 0x2bc   : > { %v949_v6 = vsub.f32 %v922_v0, %v948_v5 }
 0x2bd   : > { %v928_v7 = vpop.xlane.xlu0 %927 }
 0x2be   : > { %v930_v8 = vmul.f32 0.03125, %v928_v7  ;;  %v950_v9 = vmul.f32 %v949_v6, %v949_v6 }
 0x2c0   : > { %v931_v10 = vsub.f32 %v4488_v1, %v930_v8  ;;  %v951_v11 = vsel %vm944_vm0, %v950_v9, 0.0 }
 0x2c1   : > { %952 = vadd.xlane.f32.xlu1 %v951_v11 }
 0x2c2   : > { %v932_v12 = vmul.f32 %v931_v10, %v931_v10 }
 0x2c4   : > { %v933_v13 = vsel %vm925_vm1, %v932_v12, 0.0 }
 0x2c5   : > { %934 = vadd.xlane.f32.xlu1 %v933_v13 }
 0x34e   : > { %v953_v28 = vpop.xlane.xlu1 %952 }
 0x34f   : > { %v954_v29 = vmul.f32 0.03125, %v953_v28  ;;  %v1546_v28 = vld [vmem:[#allocation20 + $0x8] sm:$0xff] }
 0x351   : > { %v955_v30 = vadd.f32 1e-05, %v954_v29 }
 0x352   : > { %v935_v31 = vpop.xlane.xlu1 %934 }
 0x353   : > { %3194 = vrsqrt.f32 %v955_v30  ;;  %v936_v32 = vmul.f32 0.03125, %v935_v31 }
 0x355   : > { %v937_v33 = vadd.f32 1e-05, %v936_v32 }
 0x357   : > { %3196 = vrsqrt.f32 %v937_v33  ;;  %v1378_v33 = vld [vmem:[#allocation20] sm:$0xff] }
 0x35d   : > { %v3195_v34 = vpop.eup %3194 }
 0x35e   : > { %v957_v36 = vmul.f32 %v3195_v34, %v949_v6 }
 0x360   : > { %v964_v38 = vmul.f32 %v2724_v35, %v957_v36 }
 0x361   : > { %v3197_v39 = vpop.eup %3196 }
 0x362   : > { %v971_v41 = vadd.f32 %v2725_v37, %v964_v38  ;;  %v939_v42 = vmul.f32 %v3197_v39, %v931_v10 }
 0x364   : > { %2827 = vmatmul.mubr.msk.f32.vlgmr.msra.gmra.mrb[0].mxu1 %vm944_vm0, %v971_v41  ;;  %v940_v46 = vmul.f32 %v939_v42, %v923_v40 }
 0x365   : > { %2842 = vmatprep.mubr.msk.f32.mxu1 %vm3853_vm2, %v3854_v23 }
 0x366   : > { %v941_v48 = vadd.f32 %v940_v46, %v924_v45 }
 0x368   : > { %2816 = vmatmul.mubr.msk.f32.vlgmr.msra.gmra.mrb[0].mxu0 %vm944_vm0, %v941_v48 }
 0x369   : > { %2947 = vmatpush3.bf16.msra.mxu0 %v2946_v47  ;;  %2837 = vmatprep.mubr.msk.f32.mxu0 %vm3853_vm2, %v3854_v23 }
 0x36a   : > { %2948 = vmatprep.subr.bf16.mxu0 %v3852_v17 }
 0x36d   : > { %2950 = vmatpush3.bf16.msra.mxu0 %v2949_v51 }
 0x36e   : > { %2860 = vmatprep.subr.mxu0 %v3854_v23 }
 0x370   : > { %2838 = vmatmul.mubr.msk.f32.vlgmr.msra.gmra.mrb[2].mxu0 %vm944_vm0, %v971_v41 }
 0x371   : > { %2862 = vmatprep.mubr.msk.f32.mxu0 %vm3853_vm2, %v3854_v23  ;;  %2861 = vmatpush3.msra.mxu0 %v1546_v28 }
 0x372   : > { %2870 = vmatprep.subr.mxu0 %v3854_v23 }
 0x437   : > { %v1130_v53 = vpop.f32.mrb[0].mxu1 }
 0x438   : > { %v4529_v54 = vadd.f32 %v2727_v52, %v1130_v53  ;;  %v2828_v55 = vpop.f32.mrb[1].mxu1 }
 0x43a   : > { %2841 = vmatpush3.xpose.msk.msra.mxu1 %vm1215_vm3, %v4529_v54 }
 0x43b   : > { %v1046_v57 = vpop.f32.mrb[0].mxu0  ;;  %2845 = vmatprep.subr.mxu1 %v3854_v23 }
 0x43c   : > { %v4534_v58 = vadd.f32 %v1046_v57, %v976_v56  ;;  %v2817_v59 = vpop.f32.mrb[1].mxu0 }
 0x43e   : > { %2843 = vmatmul.mubr.msk.f32.vlgmr.msra.gmra.mrb[2].mxu1 %vm1215_vm3, %v4534_v58 }
 0x43f   : > { %2847 = vmatprep.mubr.msk.f32.mxu1 %vm3853_vm2, %v3854_v23 }
 0x443   : > { %v1211_v61 = vpop.f32.mrb[2].mxu0 }
 0x444   : > { %v4540_v62 = vadd.f32 %v2729_v60, %v1211_v61  ;;  %v2839_v63 = vpop.f32.mrb[3].mxu0 }
 0x446   : > { %2846 = vmatpush3.msra.mxu1 %v4540_v62 }
 0x447   : > { %2850 = vmatprep.subr.mxu1 %v3854_v23 }
 0x511   : > { %v1288_v0 = vpop.f32.mrb[2].mxu1 }
 0x512   : > { %v1292_v2 = vmul.f32 0.35355338, %v1288_v0  ;;  %v2844_v3 = vpop.f32.mrb[3].mxu1 }
 0x514   : > { %v1294_v4 = vsel %vm1293_vm4, %v1292_v2, -inf }
 0x515   : > { %1295 = vmax.xlane.f32.xlu0 %v1294_v4 }
 0x52b   : > { %1381 = vrot.lane.b32.xlu0 %v4529_v54, %s3855_s12 }
 0x5a2   : > { %v1296_v5 = vpop.xlane.xlu0 %1295 }
 0x5a3   : > { %v1297_v6 = vsub.f32 %v1292_v2, %v1296_v5 }
 0x5a5   : > { %v1298_v7 = vmul.f32 1.442695, %v1297_v6 }
 0x5a6   : > { %v1382_v13 = vpop.permute.xlu0 %1381 }
 0x5a7   : > { %3198 = vpow2.f32 %v1298_v7 }
 0x5b1   : > { %v3199_v8 = vpop.eup %3198 }
 0x5b2   : > { %v1300_v9 = vsel %vm1293_vm4, %v3199_v8, 0.0 }
 0x5b3   : > { %1301 = vadd.xlane.f32.xlu1 %v1300_v9  ;;  %v2100_v9 = vld [vmem:[#allocation20 + $0x18] sm:$0xff] }
 0x5c4   : > { %1379 = vrot.lane.b32.xlu1 %v4534_v58, %s3855_s12 }
 0x640   : > { %v1302_v10 = vpop.xlane.xlu1 %1301 }
 0x641   : > { %3200 = vrcp.f32 %v1302_v10 }
 0x644   : > { %v1380_v14 = vpop.permute.xlu1 %1379 }
 0x64b   : > { %v3201_v11 = vpop.eup %3200 }
 0x64c   : > { %v1304_v12 = vmul.f32 %v3201_v11, %v3199_v8 }
 0x64e   : > { %2848 = vmatmul.mubr.msk.f32.vlgmr.msra.gmra.mrb[4].mxu1 %vm1215_vm3, %v1304_v12 }
 0x64f   : > { %2851 = vmatpush3.xpose.msk.msra.mxu1 %vm1215_vm3, %v1382_v13  ;;  %2852 = vmatprep.mubr.msk.f32.mxu1 %vm3853_vm2, %v3854_v23 }
 0x650   : > { %2855 = vmatprep.subr.mxu1 %v3854_v23 }
 0x652   : > { %2853 = vmatmul.mubr.msk.f32.vlgmr.msra.gmra.mrb[6].mxu1 %vm1215_vm3, %v1380_v14 }
 0x653   : > { %2857 = vmatprep.mubr.msk.f32.mxu1 %vm3853_vm2, %v3854_v23 }
 0x721   : > { %v1374_v15 = vpop.f32.mrb[4].mxu1 }
 0x722   : > { %v2849_v16 = vpop.f32.mrb[5].mxu1 }
 0x725   : > { %v1453_v18 = vpop.f32.mrb[6].mxu1 }
 0x726   : > { %v1457_v19 = vmul.f32 0.35355338, %v1453_v18  ;;  %v2854_v20 = vpop.f32.mrb[7].mxu1 }
 0x728   : > { %v1458_v21 = vsel %vm1293_vm4, %v1457_v19, -inf }
 0x729   : > { %1459 = vmax.xlane.f32.xlu1 %v1458_v21 }
 0x73a   : > { %1695 = vrot.lane.b32.xlu1 %v4529_v54, %s3856_s23 }
 0x73e   : > { %1693 = vrot.lane.b32.xlu1 %v4534_v58, %s3856_s23 }
 0x7b6   : > { %v1460_v22 = vpop.xlane.xlu1 %1459 }
 0x7b7   : > { %v1461_v24 = vsub.f32 %v1457_v19, %v1460_v22  ;;  %v2175_v19 = vld [vmem:[#allocation22] sm:$0x1] }
 0x7b9   : > { %v1462_v25 = vmul.f32 1.442695, %v1461_v24 }
 0x7ba   : > { %v1696_v34 = vpop.permute.xlu1 %1695 }
 0x7bb   : > { %3202 = vpow2.f32 %v1462_v25 }
 0x7be   : > { %v1694_v37 = vpop.permute.xlu1 %1693 }
 0x7c5   : > { %v3203_v26 = vpop.eup %3202 }
 0x7c6   : > { %v1464_v27 = vsel %vm1293_vm4, %v3203_v26, 0.0 }
 0x7c7   : > { %1465 = vadd.xlane.f32.xlu0 %v1464_v27 }
 0x7dd   : > { %1470 = vrot.lane.b32.xlu0 %v4540_v62, %s3855_s12 }
 0x854   : > { %v1466_v29 = vpop.xlane.xlu0 %1465 }
 0x855   : > { %3204 = vrcp.f32 %v1466_v29 }
 0x858   : > { %v1471_v30 = vpop.permute.xlu0 %1470 }
 0x859   : > { %2856 = vmatpush3.msra.mxu1 %v1471_v30 }
 0x85a   : > { %2865 = vmatprep.subr.mxu1 %v3854_v23 }
 0x85f   : > { %v3205_v31 = vpop.eup %3204 }
 0x860   : > { %v1468_v32 = vmul.f32 %v3205_v31, %v3203_v26  ;;  %v2195_v31 = vld [vmem:[#allocation26] sm:$0xff] }
 0x862   : > { %2858 = vmatmul.mubr.msk.f32.vlgmr.msra.gmra.mrb[8].mxu1 %vm1215_vm3, %v1468_v32  ;;  %v2196_v32 = vld [vmem:[#allocation26 + $0x8] sm:$0xff] }
 0x863   : > { %2866 = vmatpush3.msra.mxu1 %v1378_v33  ;;  %2867 = vmatprep.mubr.msk.f32.mxu1 %vm3853_vm2, %v3854_v23  ;;  %v2952_v33 = vpack.c.bf16 %v2196_v32, %v2195_v31 }
 0x864   : > { %2875 = vmatprep.subr.mxu1 %v3854_v23 }
 0x866   : > { %2868 = vmatmul.mubr.msk.f32.vlgmr.msra.gmra.mrb[10].mxu1 %vm1215_vm3, %v1374_v15 }
 0x867   : > { %2877 = vmatprep.mubr.msk.f32.mxu1 %vm3853_vm2, %v3854_v23 }
 0x935   : > { %v1542_v35 = vpop.f32.mrb[8].mxu1 }
 0x936   : > { %v2859_v36 = vpop.f32.mrb[9].mxu1  ;;  %2863 = vmatmul.mubr.msk.f32.vlgmr.msra.gmra.mrb[4].mxu0 %vm1215_vm3, %v1542_v35 }
 0x937   : > { %2871 = vmatpush3.xpose.msk.msra.mxu0 %vm1215_vm3, %v1696_v34  ;;  %2872 = vmatprep.mubr.msk.f32.mxu0 %vm3853_vm2, %v3854_v23  ;;  %v2198_v34 = vld [vmem:[#allocation26 + $0x18] sm:$0xff] }
 0x938   : > { %2880 = vmatprep.subr.mxu0 %v3854_v23 }
 0x939   : > { %v1689_v38 = vpop.f32.mrb[10].mxu1 }
 0x93a   : > { %v2869_v39 = vpop.f32.mrb[11].mxu1  ;;  %2873 = vmatmul.mubr.msk.f32.vlgmr.msra.gmra.mrb[6].mxu0 %vm1215_vm3, %v1694_v37 }
 0x93b   : > { %2882 = vmatprep.mubr.msk.f32.mxu0 %vm3853_vm2, %v3854_v23 }
 0xa09   : > { %v1616_v40 = vpop.f32.mrb[4].mxu0 }
 0xa0a   : > { %v1690_v41 = vadd.f32 %v1689_v38, %v1616_v40  ;;  %v2864_v42 = vpop.f32.mrb[5].mxu0  ;;  %v2178_v40 = vld [vmem:[#allocation23] sm:$0x1] }
 0xa0b   : > { %v2179_v42 = vld [vmem:[#allocation25] sm:$0x1] }
 0xa0d   : > { %v1767_v43 = vpop.f32.mrb[6].mxu0 }
 0xa0e   : > { %v1771_v44 = vmul.f32 0.35355338, %v1767_v43  ;;  %v2874_v45 = vpop.f32.mrb[7].mxu0 }
 0xa0f   : > { %v2282_v45 = vld [vmem:[%s4814_s1] sm:$0xff] }
 0xa10   : > { %v1772_v46 = vsel %vm1293_vm4, %v1771_v44, -inf }
 0xa11   : > { %1773 = vmax.xlane.f32.xlu1 %v1772_v46  ;;  %v2283_v46 = vld [vmem:[%s4814_s1 + $0x8] sm:$0xff] }
 0xa22   : > { %1936 = vrot.lane.b32.xlu1 %v4529_v54, %s3857_s27 }
 0xa26   : > { %1934 = vrot.lane.b32.xlu1 %v4534_v58, %s3857_s27  ;;  %v1859_v58 = vld [vmem:[#allocation20 + $0x10] sm:$0xff] }
 0xa27   : > { %2881 = vmatpush3.msra.mxu0 %v1859_v58 }
 0xa28   : > { %2890 = vmatprep.subr.mxu0 %v3854_v23 }
 0xa9e   : > { %v1774_v47 = vpop.xlane.xlu1 %1773 }
 0xa9f   : > { %v1775_v48 = vsub.f32 %v1771_v44, %v1774_v47  ;;  %v2284_v47 = vld [vmem:[%s4814_s1 + $0x10] sm:$0xff] }
 0xaa1   : > { %v1776_v49 = vmul.f32 1.442695, %v1775_v48  ;;  %v2958_v48 = vpack.c.bf16 %v2283_v46, %v2282_v45 }
 0xaa2   : > { %v1937_v55 = vpop.permute.xlu1 %1936 }
 0xaa3   : > { %3206 = vpow2.f32 %v1776_v49  ;;  %v2285_v49 = vld [vmem:[%s4814_s1 + $0x18] sm:$0xff]  ;;  %s2441_s1 = scalar_lea.sflag [#allocation4], %s4445_s19 }
 0xaa6   : > { %v1935_v57 = vpop.permute.xlu1 %1934 }
 0xaad   : > { %v3207_v50 = vpop.eup %3206 }
 0xaae   : > { %v1778_v51 = vsel %vm1293_vm4, %v3207_v50, 0.0 }
 0xaaf   : > { %1779 = vadd.xlane.f32.xlu0 %v1778_v51  ;;  %v2362_v51 = vld [vmem:[#allocation29 + $0x8] sm:$0xff] }
 0xac5   : > { %1783 = vrot.lane.b32.xlu0 %v4540_v62, %s3856_s23 }
 0xb3c   : > { %v1780_v52 = vpop.xlane.xlu0 %1779 }
 0xb3d   : > { %3208 = vrcp.f32 %v1780_v52 }
 0xb40   : > { %v1784_v53 = vpop.permute.xlu0 %1783 }
 0xb41   : > { %2876 = vmatpush3.msra.mxu1 %v1784_v53  ;;  %v2199_v53 = vld [vmem:[#allocation28] sm:$0x1] }
 0xb42   : > { %2885 = vmatprep.subr.mxu1 %v3854_v23 }
 0xb47   : > { %v3209_v54 = vpop.eup %3208 }
 0xb48   : > { %v1782_v56 = vmul.f32 %v3209_v54, %v3207_v50  ;;  %v2961_v50 = vpack.c.bf16 %v2285_v49, %v2284_v47 }
 0xb4a   : > { %2878 = vmatmul.mubr.msk.f32.vlgmr.msra.gmra.mrb[12].mxu1 %vm1215_vm3, %v1782_v56 }
 0xb4b   : > { %2886 = vmatpush3.xpose.msk.msra.mxu1 %vm1215_vm3, %v1937_v55  ;;  %2887 = vmatprep.mubr.msk.f32.mxu1 %vm3853_vm2, %v3854_v23 }
 0xb4c   : > { %2895 = vmatprep.subr.mxu1 %v3854_v23 }
 0xb4e   : > { %2888 = vmatmul.mubr.msk.f32.vlgmr.msra.gmra.mrb[14].mxu1 %vm1215_vm3, %v1935_v57 }
 0xb4f   : > { %2897 = vmatprep.mubr.msk.f32.mxu1 %vm3853_vm2, %v3854_v23  ;;  %2896 = vmatpush3.msra.mxu1 %v2100_v9 }
 0xb50   : > { %2957 = vmatprep.subr.bf16.mxu1 %v3852_v17 }
 0xc1d   : > { %v1855_v59 = vpop.f32.mrb[12].mxu1 }
 0xc1e   : > { %v2879_v60 = vpop.f32.mrb[13].mxu1  ;;  %2883 = vmatmul.mubr.msk.f32.vlgmr.msra.gmra.mrb[8].mxu0 %vm1215_vm3, %v1855_v59 }
 0xc1f   : > { %2892 = vmatprep.mubr.msk.f32.mxu0 %vm3853_vm2, %v3854_v23 }
 0xc21   : > { %v2008_v61 = vpop.f32.mrb[14].mxu1 }
 0xc22   : > { %v2012_v63 = vmul.f32 0.35355338, %v2008_v61  ;;  %v2889_v0 = vpop.f32.mrb[15].mxu1 }
 0xc24   : > { %v2013_v2 = vsel %vm1293_vm4, %v2012_v63, -inf }
 0xc25   : > { %2014 = vmax.xlane.f32.xlu0 %v2013_v2 }
 0xc3b   : > { %2024 = vrot.lane.b32.xlu0 %v4540_v62, %s3857_s27  ;;  %s4817_s27 = sld [smem:[#allocation61_spill]] }
 0xcb2   : > { %v2015_v3 = vpop.xlane.xlu0 %2014 }
 0xcb3   : > { %v2016_v4 = vsub.f32 %v2012_v63, %v2015_v3 }
 0xcb5   : > { %v2017_v5 = vmul.f32 1.442695, %v2016_v4  ;;  %v2363_v4 = vld [vmem:[#allocation29 + $0x10] sm:$0xff] }
 0xcb6   : > { %v2025_v6 = vpop.permute.xlu0 %2024 }
 0xcb7   : > { %3210 = vpow2.f32 %v2017_v5  ;;  %2891 = vmatpush3.msra.mxu0 %v2025_v6  ;;  %v2286_v6 = vld [vmem:[%s4815_s3] sm:$0x1]  ;;  %s4656_s3 = scalar_lea.hbm %s4817_s27, %s2750_s7 }
 0xcb8   : > { %2951 = vmatprep.subr.bf16.mxu0 %v3852_v17 }
 0xcc1   : > { %v3211_v7 = vpop.eup %3210 }
 0xcc2   : > { %v2019_v8 = vsel %vm1293_vm4, %v3211_v7, 0.0 }
 0xcc3   : > { %2020 = vadd.xlane.f32.xlu1 %v2019_v8 }
 0xcf1   : > { %v1929_v10 = vpop.f32.mrb[8].mxu0 }
 0xcf2   : > { %v1933_v11 = vadd.f32 %v1929_v10, %v1690_v41  ;;  %v2884_v12 = vpop.f32.mrb[9].mxu0 }
 0xd50   : > { %v2021_v62 = vpop.xlane.xlu1 %2020 }
 0xd51   : > { %3212 = vrcp.f32 %v2021_v62 }
 0xd5b   : > { %v3213_v13 = vpop.eup %3212 }
 0xd5c   : > { %v2023_v14 = vmul.f32 %v3213_v13, %v3211_v7 }
 0xd5e   : > { %2893 = vmatmul.mubr.msk.f32.vlgmr.msra.gmra.mrb[10].mxu0 %vm1215_vm3, %v2023_v14 }
 0xd5f   : > { %2908 = vmatprep.mubr.msk.f32.mxu0 %vm3853_vm2, %v3854_v23  ;;  %2953 = vmatpush3.bf16.msra.mxu0 %v2952_v33 }
 0xd60   : > { %2954 = vmatprep.subr.bf16.mxu0 %v3852_v17 }
 0xe31   : > { %v2096_v15 = vpop.f32.mrb[10].mxu0 }
 0xe32   : > { %v2894_v16 = vpop.f32.mrb[11].mxu0  ;;  %2898 = vmatmul.mubr.msk.f32.vlgmr.msra.gmra.mrb[16].mxu1 %vm1215_vm3, %v2096_v15 }
 0xe33   : > { %2919 = vmatprep.mubr.msk.f32.mxu1 %vm3853_vm2, %v3854_v23  ;;  %2959 = vmatpush3.bf16.msra.mxu1 %v2958_v48 }
 0xe34   : > { %2960 = vmatprep.subr.bf16.mxu1 %v3852_v17 }
 0xe37   : > { %2962 = vmatpush3.bf16.msra.mxu1 %v2961_v50 }
 0xf05   : > { %v2170_v18 = vpop.f32.mrb[16].mxu1 }
 0xf06   : > { %v2174_v20 = vadd.f32 %v2170_v18, %v1933_v11  ;;  %v2899_v21 = vpop.f32.mrb[17].mxu1  ;;  %v2365_v11 = vld [vmem:[%s4816_s26] sm:$0x1]  ;;  %s3730_s26 = scalar_lea.vmem %s3729_s5, 32 }
 0xf07   : > { %p3732_p3 = scmp.lt.s32.totalorder %s3730_s26, %s3724_s6 }
 0xf08   : > { %v2176_v22 = vadd.f32 %v2175_v19, %v2174_v20 }
 0xf09   : > { %p3733_p2 = por %p3732_p3, %p3731_p1 }
 0xf0a   : > { %v4617_v24 = vadd.f32 %v2176_v22, %v4488_v1  ;;  %v2197_v1 = vld [vmem:[#allocation26 + $0x10] sm:$0xff] }
 0xf0b   : > { %v2955_v35 = vpack.c.bf16 %v2198_v34, %v2197_v1  ;;  %p3734_p0 = pnand %p3733_p2, %p3727_p13 }
 0xf0c   : > { %v2180_v25 = vsel %vm925_vm1, %v4617_v24, 0.0 }
 0xf0d   : > { %2181 = vadd.xlane.f32.xlu1 %v2180_v25  ;;  %2956 = vmatpush3.bf16.msra.mxu0 %v2955_v35 }
 0xf0e   : > { %2963 = vmatprep.subr.bf16.mxu0 %v3852_v17 }
 0xf9a   : > { %v2182_v26 = vpop.xlane.xlu1 %2181 }
 0xf9b   : > { %v2183_v27 = vmul.f32 0.03125, %v2182_v26 }
 0xf9d   : > { %v2184_v28 = vsub.f32 %v4617_v24, %v2183_v27 }
 0xf9f   : > { %v2185_v29 = vmul.f32 %v2184_v28, %v2184_v28 }
 0xfa1   : > { %v2186_v30 = vsel %vm925_vm1, %v2185_v29, 0.0 }
 0xfa2   : > { %2187 = vadd.xlane.f32.xlu1 %v2186_v30 }
0x102f   : > { %v2188_v36 = vpop.xlane.xlu1 %2187 }
0x1030   : > { %v2189_v37 = vmul.f32 0.03125, %v2188_v36 }
0x1032   : > { %v2190_v38 = vadd.f32 1e-05, %v2189_v37 }
0x1034   : > { %3214 = vrsqrt.f32 %v2190_v38 }
0x103e   : > { %v3215_v39 = vpop.eup %3214 }
0x103f   : > { %v2192_v41 = vmul.f32 %v3215_v39, %v2184_v28 }
0x1041   : > { %v2193_v43 = vmul.f32 %v2192_v41, %v2178_v40 }
0x1043   : > { %v2194_v44 = vadd.f32 %v2193_v43, %v2179_v42 }
0x1045   : > { %2909 = vmatmul.mubr.msk.f32.vlgmr.msra.gmra.mrb[12].mxu0 %vm944_vm0, %v2194_v44 }
0x1046   : > { %2930 = vmatprep.mubr.msk.f32.mxu0 %vm3853_vm2, %v3854_v23  ;;  %v2361_v23 = vld [vmem:[#allocation29] sm:$0xff] }
0x1047   : > { %v2964_v52 = vpack.c.bf16 %v2362_v51, %v2361_v23 }
0x1049   : > { %2965 = vmatpush3.bf16.msra.mxu0 %v2964_v52 }
0x104a   : > { %2966 = vmatprep.subr.bf16.mxu0 %v3852_v17  ;;  %v2364_v17 = vld [vmem:[#allocation29 + $0x18] sm:$0xff] }
0x104b   : > { %v2967_v5 = vpack.c.bf16 %v2364_v17, %v2363_v4 }
0x104d   : > { %2968 = vmatpush3.bf16.msra.mxu0 %v2967_v5 }
0x1118   : > { %v2269_v54 = vpop.f32.mrb[12].mxu0 }
0x1119   : > { %v2270_v55 = vadd.f32 %v2269_v54, %v2199_v53  ;;  %v2910_v56 = vpop.f32.mrb[13].mxu0 }
0x111b   : > { %v2274_v57 = vmul.f32 0.044715, %v2270_v55  ;;  %v2273_v0 = vmul.f32 0.5, %v2270_v55 }
0x111d   : > { %v2275_v58 = vmul.f32 %v2274_v57, %v2270_v55 }
0x111f   : > { %v2276_v59 = vmul.f32 %v2275_v58, %v2270_v55 }
0x1121   : > { %v2277_v60 = vadd.f32 %v2276_v59, %v2270_v55 }
0x1123   : > { %v2278_v61 = vmul.f32 0.7978846, %v2277_v60 }
0x1125   : > { %3216 = vtanh.f32 %v2278_v61 }
0x112f   : > { %v3217_v63 = vpop.eup %3216 }
0x1130   : > { %v2280_v2 = vadd.f32 1.0, %v3217_v63 }
0x1132   : > { %v2281_v3 = vmul.f32 %v2280_v2, %v2273_v0 }
0x1134   : > { %2920 = vmatmul.mubr.msk.f32.vlgmr.msra.gmra.mrb[18].mxu1 %vm944_vm0, %v2281_v3 }
0x1207   : > { %v2356_v7 = vpop.f32.mrb[18].mxu1 }
0x1208   : > { %v2357_v8 = vadd.f32 %v2356_v7, %v2286_v6  ;;  %v2921_v9 = vpop.f32.mrb[19].mxu1 }
0x120a   : > { %v2360_v10 = vadd.f32 %v2357_v8, %v4617_v24 }
0x120c   : > { %2931 = vmatmul.mubr.msk.f32.vlgmr.msra.gmra.mrb[14].mxu0 %vm944_vm0, %v2360_v10 }
0x12df   : > { %v2435_v12 = vpop.f32.mrb[14].mxu0 }
0x12e0   : > { %v2436_v62 = vadd.f32 %v2435_v12, %v2365_v11  ;;  %v2932_v13 = vpop.f32.mrb[15].mxu0 }
0x12e2   : > { %2439 = vst [vmem:[%s920_s0] sm:$0x1] %v2436_v62 }
0x12e3   : > { %3737 = shalt.err (!%p3734_p0)
}
0x12e4   : > { %s3738_s19 = scalar_lea.hbm %s4656_s3, 16  ;;  %s3742_s12 = scalar_lea.hbm %s4817_s27, 32 }
0x12e5   : > { %p3739_p8 = scmp.ne.s32.totalorder %s4656_s3, %s3738_s19  ;;  %p3743_p11 = scmp.lt.u32.totalorder %s4656_s3, %s4817_s27 }
0x12e6   : > { %p3744_p12 = scmp.lt.u32.totalorder %s3742_s12, %s3738_s19  ;;  %p3746_p10 = scmp.lt.u32.totalorder %s3738_s19, %s4656_s3 }
0x12e7   : > { %p3740_p5 = pnand %p3739_p8, %p4818_p4 }
0x12e8   : > { %p3745_p9 = por %p3744_p12, %p3743_p11 }
0x12e9   : > { %p3741_p6 = pneg %p3740_p5 }
0x12ea   : > { %p3747_p7 = por %p3746_p10, %p3745_p9 }
0x12ec   : > { %p3748_p13 = pnand %p3747_p7, %p3741_p6 }
0x12ee   : > { %3751 = shalt.err (!%p3748_p13)
}
0x12ef   : > { %3039 = dma.vmem_to_hbm [thread:$0]  (%p4818_p4), %s4658_s18, 16, %s4656_s3, %s2441_s1  }
0x12f0 PF: > { %s4819_s6 = sld [smem:[#allocation44_spill]]  ;;  %p4820_p1 = scmp.ne.s32.totalorder %s4787_s2, 0 }
0x12f1   : > { %p4821_p3 = scmp.ge.s32.totalorder %s3830_s30, 2 }
0x12f3   : > { %p3098_p2 = pnand %p4821_p3, %p4820_p1 }
0x12f6   : > { %s2465_s5 = sand.u32 1, %s4819_s6  }
0x12f7   : > { %s2466_s26 = scalar_lea.sflag [#allocation4], %s2465_s5 }
0x12f8   : > { %3813 = dma.done.wait (!%p3098_p2), %s2466_s26, 16  }
0x12f9   : > { %3815 = vsyncadd (!%p3098_p2), %s2466_s26, 4294967280  ;;  %p44_p0 = scmp.ge.s32.totalorder %s4369_s10, 4   ;;  %s4822_s3 = smov %s3822_s28 }
0x12fa   : > { %s4823_s28 = smov %s3826_s29  ;;  %s4824_s29 = smov %s4381_s9 }
0x12fb   : > { %s4825_s30 = smov %s4369_s10  ;;  %46 = sbr.rel (!%p44_p0) target bundleno = 30 (0x1e), region = 222 }
0x1302   :  { %2470 = vsyncpa [#allocation3], 1 }
0x1303   :  { %2472 = vsyncpa [#allocation3 + $0x1], 1 }
0x1304   :  { %2473 = vsyncpa [#allocation6], 1 }
0x1305   :  { %2475 = vsyncpa [#allocation6 + $0x1], 1 }
0x1306   :  { %2476 = vsyncpa [#allocation9], 1 }
0x1307   :  { %2477 = vsyncpa [#allocation12], 1 }
0x1308   :  { %2478 = vsyncpa [#allocation15], 1 }
0x1309   :  { %2479 = vsyncpa [#allocation18], 1 }
0x130a   :  { %2480 = vsyncpa [#allocation21], 1 }
0x130b   :  { %2481 = vsyncpa [#allocation24], 1 }
0x130c   :  { %2482 = vsyncpa [#allocation27], 1 }
0x130d   :  { %2483 = vsyncpa [#allocation30], 1 }
0x130e   :  { %2484 = vsyncpa [#allocation4], 1 }
0x130f   :  { %2486 = vsyncpa [#allocation4 + $0x1], 1 }

</bundles_post_ra>
